<compile_context>
chip_gen: v7x
topology: tpu7x:2x2x1
jax: 0.10.0
libtpu: 0.0.40
codegen_flags: <defaults>
</compile_context>

<pallas_src>
import math

import jax
import jax.numpy as jnp
from jax.experimental import pallas as pl
from jax.experimental.pallas import tpu as pltpu

BN_EPS = 1e-5
LANE = 128
SUBLANE = 8
NUM_SUBSET = 3


# ---------------------------------------------------------------------------
# helpers
# ---------------------------------------------------------------------------
def _round_up(x, m):
    return (x + m - 1) // m * m


def _pick_tile(total, unit, cap):
    """Largest tile t <= cap with t % unit == 0 and total % t == 0."""
    assert total % unit == 0
    t = min(cap, total)
    t -= t % unit
    while t >= unit:
        if total % t == 0:
            return t
        t -= unit
    return unit


def _pick_group(channels, num_point):
    """Channels packed per aggregation block: aim for ~128 rows, sublane-aligned."""
    best = None
    for g in range(1, channels + 1):
        if channels % g or (g * num_point) % SUBLANE:
            continue
        if g * num_point >= LANE:
            return g
        best = g
    return best if best is not None else channels


def bn_fold(gamma, beta, mean=0.0, var=1.0, eps=BN_EPS):
    scale = gamma / jnp.sqrt(var + eps)
    shift = beta - mean * scale
    return scale, shift


# ---------------------------------------------------------------------------
# Pallas kernel 1: fused channel matmul  Y = Wall @ X + bias
#   Wall has bn0 / down-BN scales folded in; rows = [3*Cout projection rows,
#   Cout down-path rows].  Lane axis = V * N * T (128-multiple).
# ---------------------------------------------------------------------------
def _proj_kernel(w_ref, x_ref, b_ref, o_ref):
    y = jnp.dot(w_ref[...], x_ref[...], preferred_element_type=jnp.float32)
    o_ref[...] = (y + b_ref[...]).astype(o_ref.dtype)


def fused_channel_matmul(w, x, bias, *, d_cap=256, s_cap=512,
                         out_dtype=jnp.bfloat16):
    """w: (D, K)  x: (K, S)  bias: (D,)  ->  (D, S).  D%8==0, S%128==0."""
    D, K = w.shape
    K2, S = x.shape
    assert K == K2 and D % SUBLANE == 0 and S % LANE == 0
    td = _pick_tile(D, SUBLANE, d_cap)
    ts = _pick_tile(S, LANE, s_cap)
    return pl.pallas_call(
        _proj_kernel,
        out_shape=jax.ShapeDtypeStruct((D, S), out_dtype),
        grid_spec=pltpu.PrefetchScalarGridSpec(
            num_scalar_prefetch=0,
            grid=(D // td, S // ts),
            in_specs=[
                pl.BlockSpec((td, K), lambda i, j: (i, 0)),
                pl.BlockSpec((K, ts), lambda i, j: (0, j)),
                pl.BlockSpec((td, 1), lambda i, j: (i, 0)),
            ],
            out_specs=pl.BlockSpec((td, ts), lambda i, j: (i, j)),
        ),
        compiler_params=pltpu.CompilerParams(
            dimension_semantics=("parallel", "parallel")),
    )(w.astype(jnp.bfloat16), x.astype(jnp.bfloat16),
      bias.reshape(D, 1).astype(jnp.float32))


# ---------------------------------------------------------------------------
# Pallas kernel 2: graph aggregation + bn + residual + relu
#   out[c*V + w, s] = relu( sum_k (A_blk[k] @ x5[k])[c*V + w, s]
#                           + shift[c] + res[c*V + w, s] )
#   A_blk is block-diagonal (G channels per block), transposed, with the bn
#   scale folded in.  Lane axis s = padded N*T.
# ---------------------------------------------------------------------------
def _agg_kernel(x_ref, a_ref, r_ref, b_ref, o_ref):
    acc = jnp.dot(a_ref[0, 0], x_ref[0], preferred_element_type=jnp.float32)
    acc += jnp.dot(a_ref[1, 0], x_ref[1], preferred_element_type=jnp.float32)
    acc += jnp.dot(a_ref[2, 0], x_ref[2], preferred_element_type=jnp.float32)
    y = acc + b_ref[...] + r_ref[...].astype(jnp.float32)
    o_ref[...] = jnp.maximum(y, 0.0).astype(o_ref.dtype)


def gcn_aggregate(x5, a_blk, res, shift_col, *, gv, s_cap=512):
    """x5: (3, C*V, S) bf16; a_blk: (3, C*V//gv, gv, gv); res: (C*V, S);
    shift_col: (C*V, 1)."""
    K, CV, S = x5.shape
    assert K == NUM_SUBSET and CV % gv == 0 and gv % SUBLANE == 0 and S % LANE == 0
    n_blk = CV // gv
    ts = _pick_tile(S, LANE, s_cap)
    return pl.pallas_call(
        _agg_kernel,
        out_shape=jax.ShapeDtypeStruct((CV, S), jnp.float32),
        grid_spec=pltpu.PrefetchScalarGridSpec(
            num_scalar_prefetch=0,
            grid=(n_blk, S // ts),
            in_specs=[
                pl.BlockSpec((NUM_SUBSET, gv, ts), lambda i, j: (0, i, j)),
                pl.BlockSpec((NUM_SUBSET, 1, gv, gv), lambda i, j: (0, i, 0, 0)),
                pl.BlockSpec((gv, ts), lambda i, j: (i, j)),
                pl.BlockSpec((gv, 1), lambda i, j: (i, 0)),
            ],
            out_specs=pl.BlockSpec((gv, ts), lambda i, j: (i, j)),
        ),
        compiler_params=pltpu.CompilerParams(
            dimension_semantics=("parallel", "parallel")),
    )(x5.astype(jnp.bfloat16), a_blk.astype(jnp.bfloat16),
      res.astype(jnp.bfloat16), shift_col.astype(jnp.float32))


# ---------------------------------------------------------------------------
# unit_gcn forward (host-side weight prep + the two kernels)
# ---------------------------------------------------------------------------
def unit_gcn_forward(x0, p):
    """x0: (N, Cin, T, V)  ->  (N, Cout, T, V)."""
    NB, Cin, T, V = x0.shape
    Cout = p["bn_gamma"].shape[0]
    groups = p["DecoupleA"].shape[1]

    # --- tiny host-side weight preparation ---------------------------------
    # learn_A = DecoupleA.repeat(1, Cout//groups, 1, 1); column-normalize.
    learn_a = jnp.tile(p["DecoupleA"], (1, Cout // groups, 1, 1))   # (3,Cout,V,V)
    norm_a = learn_a / (jnp.sum(learn_a, axis=2, keepdims=True) + 0.001)

    scale0, shift0 = bn_fold(p["bn0_gamma"], p["bn0_beta"])          # bn0 (eval)
    scale1, shift1 = bn_fold(p["bn_gamma"], p["bn_beta"])            # bn  (eval)

    # Projection rows with bn0 scale folded into the weight (feedback item 8).
    w_proj = scale0[:, None] * p["Linear_weight"].T                  # (3*Cout, Cin)
    b_proj = scale0 * p["Linear_bias"] + shift0

    has_down = p["down"] is not None
    if has_down:
        dw, db, dg, dbe = p["down"]
        dscale, dshift = bn_fold(dg, dbe)
        w_all = jnp.concatenate([w_proj, dscale[:, None] * dw.reshape(Cout, Cin)], 0)
        b_all = jnp.concatenate([b_proj, dscale * db + dshift], 0)
    else:
        w_all, b_all = w_proj, b_proj
    d_tot = w_all.shape[0]
    d_pad = _round_up(d_tot, SUBLANE)
    if d_pad != d_tot:
        w_all = jnp.pad(w_all, ((0, d_pad - d_tot), (0, 0)))
        b_all = jnp.pad(b_all, ((0, d_pad - d_tot),))

    # --- layout: (N,Cin,T,V) -> (Cin, V, N*T), batch*time padded to 128 -----
    nbt = NB * T
    nbt_pad = _round_up(nbt, LANE)
    xt = jnp.transpose(x0, (1, 3, 0, 2)).reshape(Cin, V, nbt)
    if nbt_pad != nbt:
        xt = jnp.pad(xt, ((0, 0), (0, 0), (0, nbt_pad - nbt)))
    x_in = xt.reshape(Cin, V * nbt_pad)

    # --- kernel 1: projection + bias + bn0 (+ fused down 1x1 conv + BN) -----
    y = fused_channel_matmul(w_all, x_in, b_all)          # (d_pad, V*nbt_pad) bf16
    # pure reshapes only between kernels (rows become (channel, joint)):
    x5 = y[:NUM_SUBSET * Cout].reshape(NUM_SUBSET, Cout * V, nbt_pad)
    if has_down:
        res = y[NUM_SUBSET * Cout:NUM_SUBSET * Cout + Cout].reshape(Cout * V, nbt_pad)
    else:
        res = xt.reshape(Cin * V, nbt_pad)                # identity residual (Cin==Cout)

    # --- kernel 2: block-diagonal graph aggregation + bn + residual + relu --
    G = _pick_group(Cout, V)
    gv = G * V
    # transposed, bn-scale-folded adjacency, packed block-diagonally per G channels
    at = jnp.transpose(norm_a * scale1[None, :, None, None], (0, 1, 3, 2))
    at = at.reshape(NUM_SUBSET, Cout // G, G, V, V)
    eye = jnp.eye(G, dtype=at.dtype)
    a_blk = jnp.einsum('kigvw,gh->kigvhw', at, eye).reshape(
        NUM_SUBSET, Cout // G, gv, gv)
    shift_col = jnp.repeat(shift1, V)[:, None]             # (Cout*V, 1)

    out = gcn_aggregate(x5, a_blk, res, shift_col, gv=gv)  # (Cout*V, nbt_pad) f32
    out = out[:, :nbt].reshape(Cout, V, NB, T)
    return jnp.transpose(out, (2, 0, 3, 1))                # (N, Cout, T, V)


# ---------------------------------------------------------------------------
# pure-JAX reference (f32) for correctness checking
# ---------------------------------------------------------------------------
def unit_gcn_reference(x0, p):
    NB, Cin, T, V = x0.shape
    Cout = p["bn_gamma"].shape[0]
    groups = p["DecoupleA"].shape[1]
    learn_a = jnp.tile(p["DecoupleA"], (1, Cout // groups, 1, 1))
    norm_a = learn_a / (jnp.sum(learn_a, axis=2, keepdims=True) + 0.001)
    scale0, shift0 = bn_fold(p["bn0_gamma"], p["bn0_beta"])
    scale1, shift1 = bn_fold(p["bn_gamma"], p["bn_beta"])
    y = jnp.einsum('nctw,cd->ndtw', x0, p["Linear_weight"]) \
        + p["Linear_bias"][None, :, None, None]
    y = scale0[None, :, None, None] * y + shift0[None, :, None, None]
    x5 = y.reshape(NB, NUM_SUBSET, Cout, T, V)
    agg = jnp.einsum('nkctv,kcvw->nctw', x5, norm_a)
    agg = scale1[None, :, None, None] * agg + shift1[None, :, None, None]
    if p["down"] is None:
        down = x0
    else:
        dw, db, dg, dbe = p["down"]
        ds, dsh = bn_fold(dg, dbe)
        d = jnp.einsum('nctv,dc->ndtv', x0, dw.reshape(Cout, Cin)) \
            + db[None, :, None, None]
        down = ds[None, :, None, None] * d + dsh[None, :, None, None]
    return jnp.maximum(agg + down, 0.0)


# ---------------------------------------------------------------------------
# deterministic parameter init (matches unit_gcn.__init__ shapes / inits)
# ---------------------------------------------------------------------------
def kaiming_fan_out(key, shape):
    fan_out = shape[0] * shape[2] * shape[3]
    std = math.sqrt(2.0 / fan_out)
    return std * jax.random.normal(key, shape, dtype=jnp.float32)


def build_graph_A(V):
    # Deterministic 3-subset skeleton graph: identity / inward-chain / outward-chain.
    eye = jnp.eye(V, dtype=jnp.float32)
    idx = jnp.arange(V - 1)
    inward = jnp.zeros((V, V), jnp.float32).at[idx + 1, idx].set(1.0)
    return jnp.stack([eye, inward, inward.T], axis=0)


def init_unit_gcn_params(key, in_channels, out_channels, num_point, groups):
    A = build_graph_A(num_point)
    k0, k1 = jax.random.split(key)
    return {
        "DecoupleA": jnp.tile(A.reshape(3, 1, num_point, num_point),
                              (1, groups, 1, 1)),
        "Linear_weight": math.sqrt(0.5 / (out_channels * 3))
                         * jax.random.normal(k0, (in_channels, out_channels * 3),
                                             jnp.float32),
        "Linear_bias": jnp.full((out_channels * 3,), 1e-6, jnp.float32),
        "bn0_gamma": jnp.ones((out_channels * 3,), jnp.float32),
        "bn0_beta": jnp.zeros((out_channels * 3,), jnp.float32),
        "bn_gamma": jnp.full((out_channels,), 1e-6, jnp.float32),  # bn_init(self.bn,1e-6)
        "bn_beta": jnp.zeros((out_channels,), jnp.float32),
        "down": None if in_channels == out_channels else (
            kaiming_fan_out(k1, (out_channels, in_channels, 1, 1)),
            jnp.zeros((out_channels,), jnp.float32),
            jnp.ones((out_channels,), jnp.float32),
            jnp.zeros((out_channels,), jnp.float32)),
    }


if __name__ == "__main__":
    num_point, groups = 16, 8
    key = jax.random.PRNGKey(0)
    fwd = jax.jit(unit_gcn_forward)

    # Config A: in != out -> fused down path; N*T = 128 (no padding needed).
    in_c, out_c, N, T = 3, 64, 2, 64
    k_param, k_x, key = jax.random.split(key, 3)
    params = init_unit_gcn_params(k_param, in_c, out_c, num_point, groups)
    x0 = jax.random.normal(k_x, (N, in_c, T, num_point), dtype=jnp.float32)

    out = jax.block_until_ready(fwd(x0, params))
    ref = unit_gcn_reference(x0, params)
    assert out.shape == (N, out_c, T, num_point), out.shape
    assert bool(jnp.all(jnp.isfinite(out)))
    assert bool(jnp.allclose(out, ref, rtol=2e-2, atol=2e-2)), \
        float(jnp.max(jnp.abs(out - ref)))

    # Same config with bn gamma = 1 so the aggregation branch is numerically
    # significant (the spec init uses 1e-6).
    params_g1 = dict(params, bn_gamma=jnp.ones((out_c,), jnp.float32))
    out_g1 = jax.block_until_ready(fwd(x0, params_g1))
    ref_g1 = unit_gcn_reference(x0, params_g1)
    assert bool(jnp.allclose(out_g1, ref_g1, rtol=2e-2, atol=2e-2)), \
        float(jnp.max(jnp.abs(out_g1 - ref_g1)))

    # Config B: in == out -> identity residual path; N*T = 96 exercises padding.
    in_c2, out_c2, N2, T2 = 64, 64, 2, 48
    k_param2, k_x2, key = jax.random.split(key, 3)
    params2 = init_unit_gcn_params(k_param2, in_c2, out_c2, num_point, groups)
    x2 = jax.random.normal(k_x2, (N2, in_c2, T2, num_point), dtype=jnp.float32)
    out2 = jax.block_until_ready(fwd(x2, params2))
    ref2 = unit_gcn_reference(x2, params2)
    assert out2.shape == (N2, out_c2, T2, num_point), out2.shape
    assert bool(jnp.allclose(out2, ref2, rtol=2e-2, atol=2e-2)), \
        float(jnp.max(jnp.abs(out2 - ref2)))

    print("KERNEL_OK")
</pallas_src>

<mosaic_0001>
module attributes {stable_mosaic.version = 11 : i64} {
  func.func @_proj_kernel(%arg0: i32, %arg1: i32, %arg2: memref<256x3xbf16, #tpu.memory_space<vmem>>, %arg3: memref<3x512xbf16, #tpu.memory_space<vmem>>, %arg4: memref<256x1xf32, #tpu.memory_space<vmem>>, %arg5: memref<256x512xbf16, #tpu.memory_space<vmem>>) attributes {dimension_semantics = [#tpu.dimension_semantics<parallel>, #tpu.dimension_semantics<parallel>], iteration_bounds = array<i64: 1, 4>, scalar_prefetch = 0 : i64, scratch_operands = 0 : i64, tpu.core_type = #tpu.core_type<tc>, window_params = [{transform_indices = @transform_0, window_bounds = array<i64: 256, 3>}, {transform_indices = @transform_1, window_bounds = array<i64: 3, 512>}, {transform_indices = @transform_2, window_bounds = array<i64: 256, 1>}, {transform_indices = @transform_3, window_bounds = array<i64: 256, 512>}]} {
    %c0 = arith.constant 0 : index
    %c0_0 = arith.constant 0 : index
    %0 = vector.load %arg2[%c0, %c0_0] : memref<256x3xbf16, #tpu.memory_space<vmem>>, vector<256x3xbf16>
    %c0_1 = arith.constant 0 : index
    %c0_2 = arith.constant 0 : index
    %1 = vector.load %arg3[%c0_1, %c0_2] : memref<3x512xbf16, #tpu.memory_space<vmem>>, vector<3x512xbf16>
    %cst = arith.constant dense<0.000000e+00> : vector<256x512xf32>
    %2 = tpu.matmul %0, %1, %cst {dimension_numbers = #tpu.dot_dimension_numbers<[1], [0], [0], [1], [0, 0, 1, 1], [], []>} : vector<256x3xbf16>, vector<3x512xbf16>, vector<256x512xf32> -> vector<256x512xf32>
    %c0_3 = arith.constant 0 : index
    %c0_4 = arith.constant 0 : index
    %3 = vector.load %arg4[%c0_3, %c0_4] : memref<256x1xf32, #tpu.memory_space<vmem>>, vector<256x1xf32>
    %4 = vector.broadcast %3 : vector<256x1xf32> to vector<256x512xf32>
    %5 = arith.addf %2, %4 : vector<256x512xf32>
    %6 = arith.truncf %5 : vector<256x512xf32> to vector<256x512xbf16>
    %c0_5 = arith.constant 0 : index
    %c0_6 = arith.constant 0 : index
    %7 = vector.load %arg5[%c0_5, %c0_6] : memref<256x512xbf16, #tpu.memory_space<vmem>>, vector<256x512xbf16>
    tpu.vector_store %arg5[%c0_5, %c0_6], %6 {strides = array<i32>} : memref<256x512xbf16, #tpu.memory_space<vmem>>, vector<256x512xbf16>,
    return
  }
  func.func @transform_0(%arg0: i32, %arg1: i32) -> (i32, i32) {
    %c0_i32 = arith.constant 0 : i32
    %c0_i32_0 = arith.constant 0 : i32
    return %arg0, %c0_i32 : i32, i32
  }
  func.func @transform_1(%arg0: i32, %arg1: i32) -> (i32, i32) {
    %c0_i32 = arith.constant 0 : i32
    %c0_i32_0 = arith.constant 0 : i32
    return %c0_i32, %arg1 : i32, i32
  }
  func.func @transform_2(%arg0: i32, %arg1: i32) -> (i32, i32) {
    %c0_i32 = arith.constant 0 : i32
    %c0_i32_0 = arith.constant 0 : i32
    return %arg0, %c0_i32 : i32, i32
  }
  func.func @transform_3(%arg0: i32, %arg1: i32) -> (i32, i32) {
    %c0_i32 = arith.constant 0 : i32
    return %arg0, %arg1 : i32, i32
  }
}

module attributes {stable_mosaic.version = 11 : i64} {
  func.func @_agg_kernel(%arg0: i32, %arg1: i32, %arg2: memref<3x128x128xbf16, #tpu.memory_space<vmem>>, %arg3: memref<3x1x128x128xbf16, #tpu.memory_space<vmem>>, %arg4: memref<128x128xbf16, #tpu.memory_space<vmem>>, %arg5: memref<128x1xf32, #tpu.memory_space<vmem>>, %arg6: memref<128x128xf32, #tpu.memory_space<vmem>>) attributes {dimension_semantics = [#tpu.dimension_semantics<parallel>, #tpu.dimension_semantics<parallel>], iteration_bounds = array<i64: 8, 1>, scalar_prefetch = 0 : i64, scratch_operands = 0 : i64, tpu.core_type = #tpu.core_type<tc>, window_params = [{transform_indices = @transform_0, window_bounds = array<i64: 3, 128, 128>}, {transform_indices = @transform_1, window_bounds = array<i64: 3, 1, 128, 128>}, {transform_indices = @transform_2, window_bounds = array<i64: 128, 128>}, {transform_indices = @transform_3, window_bounds = array<i64: 128, 1>}, {transform_indices = @transform_4, window_bounds = array<i64: 128, 128>}]} {
    %c0 = arith.constant 0 : index
    %c0_0 = arith.constant 0 : index
    %c0_1 = arith.constant 0 : index
    %c0_2 = arith.constant 0 : index
    %0 = vector.load %arg3[%c0, %c0_0, %c0_1, %c0_2] : memref<3x1x128x128xbf16, #tpu.memory_space<vmem>>, vector<1x1x128x128xbf16>
    %1 = vector.shape_cast %0 : vector<1x1x128x128xbf16> to vector<128x128xbf16>
    %c0_3 = arith.constant 0 : index
    %c0_4 = arith.constant 0 : index
    %c0_5 = arith.constant 0 : index
    %2 = vector.load %arg2[%c0_3, %c0_4, %c0_5] : memref<3x128x128xbf16, #tpu.memory_space<vmem>>, vector<1x128x128xbf16>
    %3 = vector.shape_cast %2 : vector<1x128x128xbf16> to vector<128x128xbf16>
    %cst = arith.constant dense<0.000000e+00> : vector<128x128xf32>
    %4 = tpu.matmul %1, %3, %cst {dimension_numbers = #tpu.dot_dimension_numbers<[1], [0], [0], [1], [0, 0, 1, 1], [], []>} : vector<128x128xbf16>, vector<128x128xbf16>, vector<128x128xf32> -> vector<128x128xf32>
    %c1 = arith.constant 1 : index
    %c0_6 = arith.constant 0 : index
    %c0_7 = arith.constant 0 : index
    %c0_8 = arith.constant 0 : index
    %5 = vector.load %arg3[%c1, %c0_6, %c0_7, %c0_8] : memref<3x1x128x128xbf16, #tpu.memory_space<vmem>>, vector<1x1x128x128xbf16>
    %6 = vector.shape_cast %5 : vector<1x1x128x128xbf16> to vector<128x128xbf16>
    %c1_9 = arith.constant 1 : index
    %c0_10 = arith.constant 0 : index
    %c0_11 = arith.constant 0 : index
    %7 = vector.load %arg2[%c1_9, %c0_10, %c0_11] : memref<3x128x128xbf16, #tpu.memory_space<vmem>>, vector<1x128x128xbf16>
    %8 = vector.shape_cast %7 : vector<1x128x128xbf16> to vector<128x128xbf16>
    %cst_12 = arith.constant dense<0.000000e+00> : vector<128x128xf32>
    %9 = tpu.matmul %6, %8, %cst_12 {dimension_numbers = #tpu.dot_dimension_numbers<[1], [0], [0], [1], [0, 0, 1, 1], [], []>} : vector<128x128xbf16>, vector<128x128xbf16>, vector<128x128xf32> -> vector<128x128xf32>
    %10 = arith.addf %4, %9 : vector<128x128xf32>
    %c2 = arith.constant 2 : index
    %c0_13 = arith.constant 0 : index
    %c0_14 = arith.constant 0 : index
    %c0_15 = arith.constant 0 : index
    %11 = vector.load %arg3[%c2, %c0_13, %c0_14, %c0_15] : memref<3x1x128x128xbf16, #tpu.memory_space<vmem>>, vector<1x1x128x128xbf16>
    %12 = vector.shape_cast %11 : vector<1x1x128x128xbf16> to vector<128x128xbf16>
    %c2_16 = arith.constant 2 : index
    %c0_17 = arith.constant 0 : index
    %c0_18 = arith.constant 0 : index
    %13 = vector.load %arg2[%c2_16, %c0_17, %c0_18] : memref<3x128x128xbf16, #tpu.memory_space<vmem>>, vector<1x128x128xbf16>
    %14 = vector.shape_cast %13 : vector<1x128x128xbf16> to vector<128x128xbf16>
    %cst_19 = arith.constant dense<0.000000e+00> : vector<128x128xf32>
    %15 = tpu.matmul %12, %14, %cst_19 {dimension_numbers = #tpu.dot_dimension_numbers<[1], [0], [0], [1], [0, 0, 1, 1], [], []>} : vector<128x128xbf16>, vector<128x128xbf16>, vector<128x128xf32> -> vector<128x128xf32>
    %16 = arith.addf %10, %15 : vector<128x128xf32>
    %c0_20 = arith.constant 0 : index
    %c0_21 = arith.constant 0 : index
    %17 = vector.load %arg5[%c0_20, %c0_21] : memref<128x1xf32, #tpu.memory_space<vmem>>, vector<128x1xf32>
    %18 = vector.broadcast %17 : vector<128x1xf32> to vector<128x128xf32>
    %19 = arith.addf %16, %18 : vector<128x128xf32>
    %c0_22 = arith.constant 0 : index
    %c0_23 = arith.constant 0 : index
    %20 = vector.load %arg4[%c0_22, %c0_23] : memref<128x128xbf16, #tpu.memory_space<vmem>>, vector<128x128xbf16>
    %21 = arith.extf %20 : vector<128x128xbf16> to vector<128x128xf32>
    %22 = arith.addf %19, %21 : vector<128x128xf32>
    %cst_24 = arith.constant 0.000000e+00 : f32
    %23 = vector.broadcast %cst_24 : f32 to vector<128x128xf32>
    %24 = arith.maximumf %22, %23 : vector<128x128xf32>
    %c0_25 = arith.constant 0 : index
    %c0_26 = arith.constant 0 : index
    %25 = vector.load %arg6[%c0_25, %c0_26] : memref<128x128xf32, #tpu.memory_space<vmem>>, vector<128x128xf32>
    tpu.vector_store %arg6[%c0_25, %c0_26], %24 {strides = array<i32>} : memref<128x128xf32, #tpu.memory_space<vmem>>, vector<128x128xf32>,
    return
  }
  func.func @transform_0(%arg0: i32, %arg1: i32) -> (i32, i32, i32) {
    %c0_i32 = arith.constant 0 : i32
    %c0_i32_0 = arith.constant 0 : i32
    return %c0_i32, %arg0, %arg1 : i32, i32, i32
  }
  func.func @transform_1(%arg0: i32, %arg1: i32) -> (i32, i32, i32, i32) {
    %c0_i32 = arith.constant 0 : i32
    %c0_i32_0 = arith.constant 0 : i32
    %c0_i32_1 = arith.constant 0 : i32
    %c0_i32_2 = arith.constant 0 : i32
    return %c0_i32, %arg0, %c0_i32_0, %c0_i32_1 : i32, i32, i32, i32
  }
  func.func @transform_2(%arg0: i32, %arg1: i32) -> (i32, i32) {
    %c0_i32 = arith.constant 0 : i32
    return %arg0, %arg1 : i32, i32
  }
  func.func @transform_3(%arg0: i32, %arg1: i32) -> (i32, i32) {
    %c0_i32 = arith.constant 0 : i32
    %c0_i32_0 = arith.constant 0 : i32
    return %arg0, %c0_i32 : i32, i32
  }
  func.func @transform_4(%arg0: i32, %arg1: i32) -> (i32, i32) {
    %c0_i32 = arith.constant 0 : i32
    return %arg0, %arg1 : i32, i32
  }
}

</mosaic_0001>

<bundles_post_ra>
// kernel: unit_gcn_forward.2
= control target key start
LH: loop header
LB: loop body
LE: loop exit
PB: predicated region body
PF: predicated region fallthrough
CT: control target
= control target key end

     0   :  { %s2015_s12 = smov 0   ;;  %s2017_s13 = smov 0   ;;  %s2490_s0 = inlined_call_operand.vmem [shape: bf16[256,3], index: 0, kind: input, shape index: {}]   ;;  %s2491_s1 = inlined_call_operand.vmem [shape: bf16[3,2048], index: 1, kind: input, shape index: {}]   ;;  %s2492_s2 = inlined_call_operand.vmem [shape: f32[256,1], index: 2, kind: input, shape index: {}]   ;;  %s2493_s3 = inlined_call_operand.vmem [shape: bf16[256,2048], index: 3, kind: output, shape index: {}]  }
   0x1   :  { %s2019_s14 = smov 0   ;;  %s2021_s15 = smov 0  }
   0x2   :  { %s2023_s16 = smov 0  }
   0x3 LB: > { %s1698_s17 = sadd.s32 4294967295, %s1990_s16   ;;  %s22_s18 = sadd.s32 1, %s1986_s15  ;;  %s1990_s16 = sphi %s2023_s16, %s13_s16   ;;  %s1986_s15 = sphi %s2021_s15, %s2498_s15   ;;  %s1982_s14 = sphi %s2019_s14, %s2497_s14   ;;  %s1978_s13 = sphi %s2017_s13, %s2496_s13   ;;  %s1974_s12 = sphi %s2015_s12, %s2495_s12  }
   0x4   : > { %p23_p0 = scmp.ge.s32.totalorder %s22_s18, 4  ;;  %s112_s19 = sadd.s32 1, %s1978_s13 }
   0x5   : > { %p122_p1 = scmp.ne.s32.totalorder %s1978_s13, %s1974_s12  ;;  %p123_p2 = scmp.eq.s32.totalorder %s1698_s17, 3 }
   0x6   : > { %s2500_s18 = smov (%p23_p0, %s22_s18), 0  ;;  %p1704_p4 = scmp.ge.s32.totalorder %s1990_s16, 1 }
   0x7   : > { %p2047_p3 = por %p123_p2, %p122_p1  ;;  %s108_s21 = ssub.s32 %s1986_s15, %s2500_s18 }
   0x8   : > { %p174_p5 = scmp.lt.s32.totalorder %s1990_s16, 5  ;;  %p110_p6 = scmp.eq.s32.totalorder %s108_s21, 0 }
   0xa   : > { %p175_p7 = pnand %p1704_p4, %p174_p5 }
   0xb   : > { %s2056_s22 = scalar_select %p110_p6, %s1978_s13, %s112_s19  }
   0xc   : > { %178 = sbr.rel (%p175_p7) target bundleno = 390 (0x186), region = 32  ;;  %s1706_s23 = sshll.u32 (!%p175_p7), %s1982_s14, 2  ;;  %v538_v0 = vlaneseq (!%p175_p7)  ;;  %v1992_v1 = vmov (!%p175_p7), 1983009808   ;;  %vm600_vm0 = vcmask (!%p175_p7), 1040384   ;;  %v1993_v4 = vmov (!%p175_p7), 0  }
   0xd   : > { %p214_p8 = scmp.lt.s32.totalorder (!%p175_p7), %s1706_s23, 15  ;;  %v536_v2 = vunpack.c.l.s4 (!%p175_p7), %v1992_v1  ;;  %648 = vmatprep.mubr.bf16.mxu0 (!%p175_p7), %v1993_v4  ;;  %841 = vmatprep.mubr.bf16.mxu1 (!%p175_p7), %v1993_v4  ;;  %vm601_vm1 = vcmask (!%p175_p7), 1041408   ;;  %v1994_v7 = vmov (!%p175_p7), 65535   ;;  %v261_v19 = vld [vmem:[%s2492_s2] sm:$0xff] (!%p175_p7)  ;;  %v263_v22 = vld [vmem:[%s2492_s2 + $0x10] sm:$0xff] (!%p175_p7)  ;;  %vm551_vm2 = vcmask (!%p175_p7), 23552  }
   0xe   : > { %v539_v3 = vshrl.u32 (!%p175_p7), %v538_v0, 7  ;;  %1933 = vset.pattern.permute.xlu0 (!%p175_p7), %v1993_v4  ;;  %1934 = vset.pattern.permute.xlu1 (!%p175_p7), %v1993_v4  ;;  %v602_v8 = vsel (!%p175_p7), %vm600_vm0, 4294967295, %v1994_v7  ;;  %v1936_v21 = vld [vmem:[%s2490_s0] sm:$0xff] (!%p175_p7)   ;;  %v262_v23 = vld [vmem:[%s2492_s2 + $0x8] sm:$0xff] (!%p175_p7)  ;;  %v264_v24 = vld [vmem:[%s2492_s2 + $0x18] sm:$0xff] (!%p175_p7)  ;;  %s204_s29 = sand.u32 (!%p175_p7), 1, %s1974_s12  }
   0xf   : > { %v537_v5 = vunpack.c.0.s8 (!%p175_p7), %v536_v2  ;;  %v603_v11 = vsel (!%p175_p7), %vm601_vm1, %v602_v8, 0  ;;  %295 = vperm.xlu0 (!%p175_p7), %1933, %v261_v19   ;;  %305 = vperm.xlu1 (!%p175_p7), %1934, %v263_v22   ;;  %v265_v25 = vld [vmem:[%s2492_s2 + $0x20] sm:$0xff] (!%p175_p7)  ;;  %v266_v26 = vld [vmem:[%s2492_s2 + $0x28] sm:$0xff] (!%p175_p7)  ;;  %v267_v28 = vld [vmem:[%s2492_s2 + $0x30] sm:$0xff] (!%p175_p7)  ;;  %s1705_s30 = sshll.u32 (!%p175_p7), %s204_s29, 9 }
  0x10   : > { %v1937_v27 = vld [vmem:[%s2490_s0 + $0x8] sm:$0xff] (!%p175_p7)   ;;  %v268_v29 = vld [vmem:[%s2492_s2 + $0x38] sm:$0xff] (!%p175_p7)  ;;  %v269_v30 = vld [vmem:[%s2492_s2 + $0x40] sm:$0xff] (!%p175_p7)  ;;  %s2273_s12 = scalar_lea.vmem (!%p175_p7), [#allocation2], %s1705_s30 }
  0x11   : > { %v540_v6 = vsub.s32 (!%p175_p7), %v537_v5, %v539_v3  ;;  %v270_v31 = vld [vmem:[%s2492_s2 + $0x48] sm:$0xff] (!%p175_p7)  ;;  %v1938_v32 = vld [vmem:[%s2490_s0 + $0x10] sm:$0xff] (!%p175_p7)   ;;  %v272_v34 = vld [vmem:[%s2492_s2 + $0x58] sm:$0xff] (!%p175_p7) }
  0x12   : > { %v271_v33 = vld [vmem:[%s2492_s2 + $0x50] sm:$0xff] (!%p175_p7)  ;;  %v273_v35 = vld [vmem:[%s2492_s2 + $0x60] sm:$0xff] (!%p175_p7)  ;;  %v274_v36 = vld [vmem:[%s2492_s2 + $0x68] sm:$0xff] (!%p175_p7) }
  0x13   : > { %s2502_s23 = smov (!%p214_p8, %s1706_s23), 15  ;;  %300 = vperm.xlu0 %1933, %v262_v23   ;;  %310 = vperm.xlu1 %1934, %v264_v24   ;;  %v1939_v37 = vld [vmem:[%s2490_s0 + $0x18] sm:$0xff]   ;;  %v275_v38 = vld [vmem:[%s2492_s2 + $0x70] sm:$0xff]  ;;  %v277_v40 = vld [vmem:[%s2492_s2 + $0x80] sm:$0xff]  ;;  %s1889_s4 = sshll.u32 (%p2047_p3), %s1982_s14, 4 }
  0x14   : > { %s1707_s24 = sshll.u32 %s2502_s23, 1  ;;  %v276_v39 = vld [vmem:[%s2492_s2 + $0x78] sm:$0xff]  ;;  %v278_v41 = vld [vmem:[%s2492_s2 + $0x88] sm:$0xff]  ;;  %v1940_v42 = vld [vmem:[%s2490_s0 + $0x20] sm:$0xff]   ;;  %s2348_s7 = scalar_lea.vmem (%p2047_p3), %s2493_s3, %s1889_s4 }
  0x15   : > { %s217_s27 = scalar_lea.vmem %s2491_s1, %s1707_s24  ;;  %v279_v43 = vld [vmem:[%s2492_s2 + $0x90] sm:$0xff]  ;;  %v280_v44 = vld [vmem:[%s2492_s2 + $0x98] sm:$0xff]  ;;  %v281_v45 = vld [vmem:[%s2492_s2 + $0xa0] sm:$0xff] }
  0x16   : > { %v260_v9 = vld [vmem:[%s217_s27] sm:$0xff]  ;;  %v282_v46 = vld [vmem:[%s2492_s2 + $0xa8] sm:$0xff]  ;;  %v283_v48 = vld [vmem:[%s2492_s2 + $0xb0] sm:$0xff] }
  0x17   : > { %v541_v10 = vrot.slane %v260_v9, %v540_v6  ;;  %v534_v12 = vcombine.high %v260_v9, %v260_v9  ;;  %315 = vperm.xlu0 %1933, %v265_v25   ;;  %320 = vperm.xlu1 %1934, %v266_v26   ;;  %v1941_v47 = vld [vmem:[%s2490_s0 + $0x28] sm:$0xff]   ;;  %v284_v49 = vld [vmem:[%s2492_s2 + $0xb8] sm:$0xff]  ;;  %v285_v50 = vld [vmem:[%s2492_s2 + $0xc0] sm:$0xff] }
  0x18   : > { %v286_v51 = vld [vmem:[%s2492_s2 + $0xc8] sm:$0xff]  ;;  %v1942_v52 = vld [vmem:[%s2490_s0 + $0x30] sm:$0xff]   ;;  %v288_v54 = vld [vmem:[%s2492_s2 + $0xd8] sm:$0xff] }
  0x19   : > { %v549_v13 = vcombine.high %v541_v10, %v541_v10  ;;  %v548_v14 = vrot.slane %v534_v12, %v540_v6  ;;  %v605_v15 = vand.u32 %v603_v11, %v541_v10  ;;  %v287_v53 = vld [vmem:[%s2492_s2 + $0xd0] sm:$0xff]  ;;  %v289_v55 = vld [vmem:[%s2492_s2 + $0xe0] sm:$0xff]  ;;  %v290_v56 = vld [vmem:[%s2492_s2 + $0xe8] sm:$0xff] }
  0x1a   : > { %v1943_v57 = vld [vmem:[%s2490_s0 + $0x38] sm:$0xff]   ;;  %v291_v58 = vld [vmem:[%s2492_s2 + $0xf0] sm:$0xff]  ;;  %v1944_v60 = vld [vmem:[%s2490_s0 + $0x40] sm:$0xff]  }
  0x1b   : > { %v608_v16 = vand.u32 %v603_v11, %v549_v13  ;;  %v550_v17 = vcombine.high %v548_v14, %v548_v14  ;;  %v611_v18 = vand.u32 %v603_v11, %v548_v14  ;;  %325 = vperm.xlu0 %1933, %v267_v28   ;;  %330 = vperm.xlu1 %1934, %v268_v29   ;;  %v292_v59 = vld [vmem:[%s2492_s2 + $0xf8] sm:$0xff]  ;;  %v1945_v61 = vld [vmem:[%s2490_s0 + $0x48] sm:$0xff]   ;;  %v1946_v62 = vld [vmem:[%s2490_s0 + $0x50] sm:$0xff]  }
  0x1c   : > { %v1947_v63 = vld [vmem:[%s2490_s0 + $0x58] sm:$0xff]   ;;  %v1948_v0 = vld [vmem:[%s2490_s0 + $0x60] sm:$0xff]   ;;  %v1949_v1 = vld [vmem:[%s2490_s0 + $0x68] sm:$0xff]  }
  0x1d   : > { %616 = vmatprep.subr.bf16.mxu0 %v608_v16  ;;  %v614_v20 = vand.u32 %v603_v11, %v550_v17  ;;  %v1950_v2 = vld [vmem:[%s2490_s0 + $0x70] sm:$0xff]   ;;  %v1951_v3 = vld [vmem:[%s2490_s0 + $0x78] sm:$0xff]  }
  0x1e   : > { %617 = vmatpush1.bf16.msra.mxu0 %v605_v15 }
  0x1f   : > { %809 = vmatprep.subr.bf16.mxu1 %v614_v20  ;;  %335 = vperm.xlu0 %1933, %v269_v30  }
  0x20   : > { %810 = vmatpush1.bf16.msra.mxu1 %v611_v18  ;;  %340 = vperm.xlu1 %1934, %v270_v31  }
  0x21   : > { %1724 = vmatmul.mubr.msk.bf16.vlgmr.msra.gmra.mrb[0].mxu0 %vm551_vm2, %v1936_v21 }
  0x22   : > { %658 = vmatprep.mubr.bf16.mxu0 %v1993_v4 }
  0x23   : > { %1740 = vmatmul.mubr.msk.bf16.vlgmr.msra.gmra.mrb[0].mxu1 %vm551_vm2, %v1936_v21  ;;  %345 = vperm.xlu0 %1933, %v271_v33  }
  0x24   : > { %851 = vmatprep.mubr.bf16.mxu1 %v1993_v4  ;;  %350 = vperm.xlu1 %1934, %v272_v34  }
  0x27   : > { %355 = vperm.xlu0 %1933, %v273_v35  }
  0x28   : > { %360 = vperm.xlu1 %1934, %v274_v36  }
  0x29   : > { %1725 = vmatmul.mubr.msk.bf16.gmra.mrb[4].mxu0 %vm551_vm2, %v1937_v27 }
  0x2a   : > { %668 = vmatprep.mubr.bf16.mxu0 %v1993_v4 }
  0x2b   : > { %1741 = vmatmul.mubr.msk.bf16.gmra.mrb[4].mxu1 %vm551_vm2, %v1937_v27  ;;  %365 = vperm.xlu0 %1933, %v275_v38  }
  0x2c   : > { %861 = vmatprep.mubr.bf16.mxu1 %v1993_v4  ;;  %370 = vperm.xlu1 %1934, %v276_v39  }
  0x2f   : > { %375 = vperm.xlu0 %1933, %v277_v40  }
  0x30   : > { %380 = vperm.xlu1 %1934, %v278_v41  }
  0x31   : > { %1726 = vmatmul.mubr.msk.bf16.gmra.mrb[8].mxu0 %vm551_vm2, %v1938_v32 }
  0x32   : > { %678 = vmatprep.mubr.bf16.mxu0 %v1993_v4 }
  0x33   : > { %1742 = vmatmul.mubr.msk.bf16.gmra.mrb[8].mxu1 %vm551_vm2, %v1938_v32  ;;  %385 = vperm.xlu0 %1933, %v279_v43  }
  0x34   : > { %871 = vmatprep.mubr.bf16.mxu1 %v1993_v4  ;;  %390 = vperm.xlu1 %1934, %v280_v44  }
  0x37   : > { %395 = vperm.xlu0 %1933, %v281_v45  }
  0x38   : > { %400 = vperm.xlu1 %1934, %v282_v46  }
  0x39   : > { %1727 = vmatmul.mubr.msk.bf16.gmra.mrb[12].mxu0 %vm551_vm2, %v1939_v37 }
  0x3a   : > { %688 = vmatprep.mubr.bf16.mxu0 %v1993_v4 }
  0x3b   : > { %1743 = vmatmul.mubr.msk.bf16.gmra.mrb[12].mxu1 %vm551_vm2, %v1939_v37  ;;  %405 = vperm.xlu0 %1933, %v283_v48  }
  0x3c   : > { %881 = vmatprep.mubr.bf16.mxu1 %v1993_v4  ;;  %410 = vperm.xlu1 %1934, %v284_v49  }
  0x3f   : > { %415 = vperm.xlu0 %1933, %v285_v50  }
  0x40   : > { %420 = vperm.xlu1 %1934, %v286_v51  }
  0x41   : > { %1728 = vmatmul.mubr.msk.bf16.gmra.mrb[16].mxu0 %vm551_vm2, %v1940_v42 }
  0x42   : > { %698 = vmatprep.mubr.bf16.mxu0 %v1993_v4 }
  0x43   : > { %1744 = vmatmul.mubr.msk.bf16.gmra.mrb[16].mxu1 %vm551_vm2, %v1940_v42  ;;  %425 = vperm.xlu0 %1933, %v287_v53  }
  0x44   : > { %891 = vmatprep.mubr.bf16.mxu1 %v1993_v4  ;;  %430 = vperm.xlu1 %1934, %v288_v54  }
  0x47   : > { %435 = vperm.xlu0 %1933, %v289_v55  }
  0x48   : > { %440 = vperm.xlu1 %1934, %v290_v56  }
  0x49   : > { %1729 = vmatmul.mubr.msk.bf16.gmra.mrb[20].mxu0 %vm551_vm2, %v1941_v47 }
  0x4a   : > { %708 = vmatprep.mubr.bf16.mxu0 %v1993_v4 }
  0x4b   : > { %1745 = vmatmul.mubr.msk.bf16.gmra.mrb[20].mxu1 %vm551_vm2, %v1941_v47  ;;  %445 = vperm.xlu0 %1933, %v291_v58  }
  0x4c   : > { %901 = vmatprep.mubr.bf16.mxu1 %v1993_v4  ;;  %450 = vperm.xlu1 %1934, %v292_v59  }
  0x51   : > { %1730 = vmatmul.mubr.msk.bf16.gmra.mrb[24].mxu0 %vm551_vm2, %v1942_v52 }
  0x52   : > { %718 = vmatprep.mubr.bf16.mxu0 %v1993_v4 }
  0x53   : > { %1746 = vmatmul.mubr.msk.bf16.gmra.mrb[24].mxu1 %vm551_vm2, %v1942_v52 }
  0x54   : > { %911 = vmatprep.mubr.bf16.mxu1 %v1993_v4 }
  0x59   : > { %1731 = vmatmul.mubr.msk.bf16.gmra.mrb[28].mxu0 %vm551_vm2, %v1943_v57 }
  0x5a   : > { %728 = vmatprep.mubr.bf16.mxu0 %v1993_v4 }
  0x5b   : > { %1747 = vmatmul.mubr.msk.bf16.gmra.mrb[28].mxu1 %vm551_vm2, %v1943_v57 }
  0x5c   : > { %921 = vmatprep.mubr.bf16.mxu1 %v1993_v4 }
  0x61   : > { %1732 = vmatmul.mubr.msk.bf16.gmra.mrb[32].mxu0 %vm551_vm2, %v1944_v60 }
  0x62   : > { %738 = vmatprep.mubr.bf16.mxu0 %v1993_v4 }
  0x63   : > { %1748 = vmatmul.mubr.msk.bf16.gmra.mrb[32].mxu1 %vm551_vm2, %v1944_v60 }
  0x64   : > { %931 = vmatprep.mubr.bf16.mxu1 %v1993_v4 }
  0x69   : > { %1733 = vmatmul.mubr.msk.bf16.gmra.mrb[36].mxu0 %vm551_vm2, %v1945_v61 }
  0x6a   : > { %748 = vmatprep.mubr.bf16.mxu0 %v1993_v4 }
  0x6b   : > { %1749 = vmatmul.mubr.msk.bf16.gmra.mrb[36].mxu1 %vm551_vm2, %v1945_v61 }
  0x6c   : > { %941 = vmatprep.mubr.bf16.mxu1 %v1993_v4 }
  0x71   : > { %1734 = vmatmul.mubr.msk.bf16.gmra.mrb[40].mxu0 %vm551_vm2, %v1946_v62 }
  0x72   : > { %758 = vmatprep.mubr.bf16.mxu0 %v1993_v4 }
  0x73   : > { %1750 = vmatmul.mubr.msk.bf16.gmra.mrb[40].mxu1 %vm551_vm2, %v1946_v62 }
  0x74   : > { %951 = vmatprep.mubr.bf16.mxu1 %v1993_v4 }
  0x79   : > { %1735 = vmatmul.mubr.msk.bf16.gmra.mrb[44].mxu0 %vm551_vm2, %v1947_v63 }
  0x7a   : > { %768 = vmatprep.mubr.bf16.mxu0 %v1993_v4 }
  0x7b   : > { %1751 = vmatmul.mubr.msk.bf16.gmra.mrb[44].mxu1 %vm551_vm2, %v1947_v63 }
  0x7c   : > { %961 = vmatprep.mubr.bf16.mxu1 %v1993_v4 }
  0x81   : > { %1736 = vmatmul.mubr.msk.bf16.gmra.mrb[48].mxu0 %vm551_vm2, %v1948_v0 }
  0x82   : > { %778 = vmatprep.mubr.bf16.mxu0 %v1993_v4 }
  0x83   : > { %1752 = vmatmul.mubr.msk.bf16.gmra.mrb[48].mxu1 %vm551_vm2, %v1948_v0 }
  0x84   : > { %971 = vmatprep.mubr.bf16.mxu1 %v1993_v4 }
  0x89   : > { %1737 = vmatmul.mubr.msk.bf16.gmra.mrb[52].mxu0 %vm551_vm2, %v1949_v1 }
  0x8a   : > { %788 = vmatprep.mubr.bf16.mxu0 %v1993_v4 }
  0x8b   : > { %1753 = vmatmul.mubr.msk.bf16.gmra.mrb[52].mxu1 %vm551_vm2, %v1949_v1 }
  0x8c   : > { %981 = vmatprep.mubr.bf16.mxu1 %v1993_v4 }
  0x8e   : > { %v296_v5 = vpop.permute.xlu0 %295  ;;  %v306_v10 = vpop.permute.xlu1 %305 }
  0x91   : > { %1738 = vmatmul.mubr.msk.bf16.gmra.mrb[56].mxu0 %vm551_vm2, %v1950_v2 }
  0x92   : > { %798 = vmatprep.mubr.bf16.mxu0 %v1993_v4  ;;  %v301_v7 = vpop.permute.xlu0 %300  ;;  %v311_v28 = vpop.permute.xlu1 %310 }
  0x93   : > { %1754 = vmatmul.mubr.msk.bf16.gmra.mrb[56].mxu1 %vm551_vm2, %v1950_v2 }
  0x94   : > { %991 = vmatprep.mubr.bf16.mxu1 %v1993_v4 }
  0x96   : > { %v316_v47 = vpop.permute.xlu0 %315  ;;  %v321_v50 = vpop.permute.xlu1 %320 }
  0x99   : > { %1739 = vmatmul.mubr.msk.bf16.gmra.mrb[60].mxu0 %vm551_vm2, %v1951_v3 }
  0x9b   : > { %1755 = vmatmul.mubr.msk.bf16.gmra.mrb[60].mxu1 %vm551_vm2, %v1951_v3 }
  0xf4   : > { %v650_v6 = vpop.f32.mrb[0].mxu0 }
  0xf5   : > { %v651_v8 = vadd.f32 %v650_v6, %v296_v5  ;;  %v652_v9 = vpop.f32.mrb[1].mxu0  ;;  %v326_v6 = vpop.permute.xlu0 %325 }
  0xf6   : > { %v653_v11 = vadd.f32 %v652_v9, %v296_v5  ;;  %v654_v12 = vpop.f32.mrb[2].mxu0  ;;  %v843_v13 = vpop.f32.mrb[0].mxu1 }
  0xf7   : > { %v655_v4 = vadd.f32 %v654_v12, %v301_v7  ;;  %v844_v14 = vadd.f32 %v843_v13, %v296_v5  ;;  %v656_v15 = vpop.f32.mrb[3].mxu0  ;;  %v845_v16 = vpop.f32.mrb[1].mxu1 }
  0xf8   : > { %v1825_v17 = vpack.c.bf16 %v653_v11, %v651_v8  ;;  %v657_v18 = vadd.f32 %v656_v15, %v301_v7  ;;  %v846_v19 = vadd.f32 %v845_v16, %v296_v5  ;;  %v847_v20 = vpop.f32.mrb[2].mxu1  ;;  %v331_v9 = vpop.permute.xlu1 %330 }
  0xf9   : > { %v848_v21 = vadd.f32 %v847_v20, %v301_v7  ;;  %v849_v22 = vpop.f32.mrb[3].mxu1 }
  0xfa   : > { %1386 = vst [vmem:[%s2273_s12] sm:$0xff] %v1825_v17  ;;  %v1827_v23 = vpack.c.bf16 %v657_v18, %v655_v4  ;;  %v1826_v24 = vpack.c.bf16 %v846_v19, %v844_v14  ;;  %v850_v25 = vadd.f32 %v849_v22, %v301_v7 }
  0xfc   : > { %1388 = vst [vmem:[%s2273_s12 + $0x10] sm:$0xff] %v1827_v23  ;;  %1387 = vst [vmem:[%s2273_s12 + $0x8] sm:$0xff] %v1826_v24  ;;  %v1828_v26 = vpack.c.bf16 %v850_v25, %v848_v21  ;;  %v660_v27 = vpop.f32.mrb[4].mxu0 }
  0xfd   : > { %v661_v29 = vadd.f32 %v660_v27, %v306_v10  ;;  %v662_v30 = vpop.f32.mrb[5].mxu0  ;;  %v336_v27 = vpop.permute.xlu0 %335 }
  0xfe   : > { %1389 = vst [vmem:[%s2273_s12 + $0x18] sm:$0xff] %v1828_v26  ;;  %v663_v31 = vadd.f32 %v662_v30, %v306_v10  ;;  %v664_v32 = vpop.f32.mrb[6].mxu0  ;;  %v853_v33 = vpop.f32.mrb[4].mxu1 }
  0xff   : > { %v665_v34 = vadd.f32 %v664_v32, %v311_v28  ;;  %v854_v35 = vadd.f32 %v853_v33, %v306_v10  ;;  %v666_v36 = vpop.f32.mrb[7].mxu0  ;;  %v855_v37 = vpop.f32.mrb[5].mxu1 }
 0x100   : > { %v1829_v38 = vpack.c.bf16 %v663_v31, %v661_v29  ;;  %v667_v39 = vadd.f32 %v666_v36, %v311_v28  ;;  %v856_v40 = vadd.f32 %v855_v37, %v306_v10  ;;  %v857_v41 = vpop.f32.mrb[6].mxu1  ;;  %v341_v30 = vpop.permute.xlu1 %340 }
 0x101   : > { %v858_v42 = vadd.f32 %v857_v41, %v311_v28  ;;  %v859_v43 = vpop.f32.mrb[7].mxu1 }
 0x102   : > { %1390 = vst [vmem:[%s2273_s12 + $0x20] sm:$0xff] %v1829_v38  ;;  %v1831_v44 = vpack.c.bf16 %v667_v39, %v665_v34  ;;  %v1830_v45 = vpack.c.bf16 %v856_v40, %v854_v35  ;;  %v860_v46 = vadd.f32 %v859_v43, %v311_v28 }
 0x104   : > { %1392 = vst [vmem:[%s2273_s12 + $0x30] sm:$0xff] %v1831_v44  ;;  %1391 = vst [vmem:[%s2273_s12 + $0x28] sm:$0xff] %v1830_v45  ;;  %v1832_v48 = vpack.c.bf16 %v860_v46, %v858_v42  ;;  %v670_v49 = vpop.f32.mrb[8].mxu0 }
 0x105   : > { %v671_v51 = vadd.f32 %v670_v49, %v316_v47  ;;  %v672_v52 = vpop.f32.mrb[9].mxu0  ;;  %v346_v49 = vpop.permute.xlu0 %345 }
 0x106   : > { %1393 = vst [vmem:[%s2273_s12 + $0x38] sm:$0xff] %v1832_v48  ;;  %v673_v53 = vadd.f32 %v672_v52, %v316_v47  ;;  %v674_v54 = vpop.f32.mrb[10].mxu0  ;;  %v863_v55 = vpop.f32.mrb[8].mxu1 }
 0x107   : > { %v675_v56 = vadd.f32 %v674_v54, %v321_v50  ;;  %v864_v57 = vadd.f32 %v863_v55, %v316_v47  ;;  %v676_v58 = vpop.f32.mrb[11].mxu0  ;;  %v865_v59 = vpop.f32.mrb[9].mxu1 }
 0x108   : > { %v1833_v60 = vpack.c.bf16 %v673_v53, %v671_v51  ;;  %v677_v61 = vadd.f32 %v676_v58, %v321_v50  ;;  %v866_v62 = vadd.f32 %v865_v59, %v316_v47  ;;  %v867_v63 = vpop.f32.mrb[10].mxu1  ;;  %v351_v52 = vpop.permute.xlu1 %350 }
 0x109   : > { %v868_v0 = vadd.f32 %v867_v63, %v321_v50  ;;  %v869_v1 = vpop.f32.mrb[11].mxu1 }
 0x10a   : > { %1394 = vst [vmem:[%s2273_s12 + $0x40] sm:$0xff] %v1833_v60  ;;  %v1835_v2 = vpack.c.bf16 %v677_v61, %v675_v56  ;;  %v1834_v3 = vpack.c.bf16 %v866_v62, %v864_v57  ;;  %v870_v5 = vadd.f32 %v869_v1, %v321_v50 }
 0x10c   : > { %1396 = vst [vmem:[%s2273_s12 + $0x50] sm:$0xff] %v1835_v2  ;;  %1395 = vst [vmem:[%s2273_s12 + $0x48] sm:$0xff] %v1834_v3  ;;  %v1836_v7 = vpack.c.bf16 %v870_v5, %v868_v0  ;;  %v680_v8 = vpop.f32.mrb[12].mxu0 }
 0x10d   : > { %v681_v10 = vadd.f32 %v680_v8, %v326_v6  ;;  %v682_v11 = vpop.f32.mrb[13].mxu0  ;;  %v356_v8 = vpop.permute.xlu0 %355 }
 0x10e   : > { %1397 = vst [vmem:[%s2273_s12 + $0x58] sm:$0xff] %v1836_v7  ;;  %v683_v12 = vadd.f32 %v682_v11, %v326_v6  ;;  %v684_v13 = vpop.f32.mrb[14].mxu0  ;;  %v873_v4 = vpop.f32.mrb[12].mxu1 }
 0x10f   : > { %v685_v14 = vadd.f32 %v684_v13, %v331_v9  ;;  %v874_v15 = vadd.f32 %v873_v4, %v326_v6  ;;  %v686_v16 = vpop.f32.mrb[15].mxu0  ;;  %v875_v17 = vpop.f32.mrb[13].mxu1 }
 0x110   : > { %v1837_v18 = vpack.c.bf16 %v683_v12, %v681_v10  ;;  %v687_v19 = vadd.f32 %v686_v16, %v331_v9  ;;  %v876_v20 = vadd.f32 %v875_v17, %v326_v6  ;;  %v877_v21 = vpop.f32.mrb[14].mxu1  ;;  %v361_v11 = vpop.permute.xlu1 %360 }
 0x111   : > { %v878_v22 = vadd.f32 %v877_v21, %v331_v9  ;;  %v879_v23 = vpop.f32.mrb[15].mxu1 }
 0x112   : > { %1398 = vst [vmem:[%s2273_s12 + $0x60] sm:$0xff] %v1837_v18  ;;  %v1839_v24 = vpack.c.bf16 %v687_v19, %v685_v14  ;;  %v1838_v25 = vpack.c.bf16 %v876_v20, %v874_v15  ;;  %v880_v26 = vadd.f32 %v879_v23, %v331_v9 }
 0x114   : > { %1400 = vst [vmem:[%s2273_s12 + $0x70] sm:$0xff] %v1839_v24  ;;  %1399 = vst [vmem:[%s2273_s12 + $0x68] sm:$0xff] %v1838_v25  ;;  %v1840_v28 = vpack.c.bf16 %v880_v26, %v878_v22  ;;  %v690_v29 = vpop.f32.mrb[16].mxu0 }
 0x115   : > { %v691_v31 = vadd.f32 %v690_v29, %v336_v27  ;;  %v692_v32 = vpop.f32.mrb[17].mxu0  ;;  %v366_v29 = vpop.permute.xlu0 %365 }
 0x116   : > { %1401 = vst [vmem:[%s2273_s12 + $0x78] sm:$0xff] %v1840_v28  ;;  %v693_v33 = vadd.f32 %v692_v32, %v336_v27  ;;  %v694_v34 = vpop.f32.mrb[18].mxu0  ;;  %v883_v35 = vpop.f32.mrb[16].mxu1 }
 0x117   : > { %v695_v36 = vadd.f32 %v694_v34, %v341_v30  ;;  %v884_v37 = vadd.f32 %v883_v35, %v336_v27  ;;  %v696_v38 = vpop.f32.mrb[19].mxu0  ;;  %v885_v39 = vpop.f32.mrb[17].mxu1 }
 0x118   : > { %v1841_v40 = vpack.c.bf16 %v693_v33, %v691_v31  ;;  %v697_v41 = vadd.f32 %v696_v38, %v341_v30  ;;  %v886_v42 = vadd.f32 %v885_v39, %v336_v27  ;;  %v887_v43 = vpop.f32.mrb[18].mxu1  ;;  %v371_v32 = vpop.permute.xlu1 %370 }
 0x119   : > { %v888_v44 = vadd.f32 %v887_v43, %v341_v30  ;;  %v889_v45 = vpop.f32.mrb[19].mxu1 }
 0x11a   : > { %1402 = vst [vmem:[%s2273_s12 + $0x80] sm:$0xff] %v1841_v40  ;;  %v1843_v46 = vpack.c.bf16 %v697_v41, %v695_v36  ;;  %v1842_v47 = vpack.c.bf16 %v886_v42, %v884_v37  ;;  %v890_v48 = vadd.f32 %v889_v45, %v341_v30 }
 0x11c   : > { %1404 = vst [vmem:[%s2273_s12 + $0x90] sm:$0xff] %v1843_v46  ;;  %1403 = vst [vmem:[%s2273_s12 + $0x88] sm:$0xff] %v1842_v47  ;;  %v1844_v50 = vpack.c.bf16 %v890_v48, %v888_v44  ;;  %v700_v51 = vpop.f32.mrb[20].mxu0 }
 0x11d   : > { %v701_v53 = vadd.f32 %v700_v51, %v346_v49  ;;  %v702_v54 = vpop.f32.mrb[21].mxu0  ;;  %v376_v51 = vpop.permute.xlu0 %375 }
 0x11e   : > { %1405 = vst [vmem:[%s2273_s12 + $0x98] sm:$0xff] %v1844_v50  ;;  %v703_v55 = vadd.f32 %v702_v54, %v346_v49  ;;  %v704_v56 = vpop.f32.mrb[22].mxu0  ;;  %v893_v57 = vpop.f32.mrb[20].mxu1 }
 0x11f   : > { %v705_v58 = vadd.f32 %v704_v56, %v351_v52  ;;  %v894_v59 = vadd.f32 %v893_v57, %v346_v49  ;;  %v706_v60 = vpop.f32.mrb[23].mxu0  ;;  %v895_v61 = vpop.f32.mrb[21].mxu1 }
 0x120   : > { %v1845_v62 = vpack.c.bf16 %v703_v55, %v701_v53  ;;  %v707_v63 = vadd.f32 %v706_v60, %v351_v52  ;;  %v896_v0 = vadd.f32 %v895_v61, %v346_v49  ;;  %v897_v1 = vpop.f32.mrb[22].mxu1  ;;  %v381_v54 = vpop.permute.xlu1 %380 }
 0x121   : > { %v898_v2 = vadd.f32 %v897_v1, %v351_v52  ;;  %v899_v3 = vpop.f32.mrb[23].mxu1 }
 0x122   : > { %1406 = vst [vmem:[%s2273_s12 + $0xa0] sm:$0xff] %v1845_v62  ;;  %v1847_v5 = vpack.c.bf16 %v707_v63, %v705_v58  ;;  %v1846_v6 = vpack.c.bf16 %v896_v0, %v894_v59  ;;  %v900_v7 = vadd.f32 %v899_v3, %v351_v52 }
 0x124   : > { %1408 = vst [vmem:[%s2273_s12 + $0xb0] sm:$0xff] %v1847_v5  ;;  %1407 = vst [vmem:[%s2273_s12 + $0xa8] sm:$0xff] %v1846_v6  ;;  %v1848_v9 = vpack.c.bf16 %v900_v7, %v898_v2  ;;  %v710_v10 = vpop.f32.mrb[24].mxu0 }
 0x125   : > { %v711_v12 = vadd.f32 %v710_v10, %v356_v8  ;;  %v712_v13 = vpop.f32.mrb[25].mxu0  ;;  %v386_v10 = vpop.permute.xlu0 %385 }
 0x126   : > { %1409 = vst [vmem:[%s2273_s12 + $0xb8] sm:$0xff] %v1848_v9  ;;  %v713_v4 = vadd.f32 %v712_v13, %v356_v8  ;;  %v714_v14 = vpop.f32.mrb[26].mxu0  ;;  %v903_v15 = vpop.f32.mrb[24].mxu1 }
 0x127   : > { %v715_v16 = vadd.f32 %v714_v14, %v361_v11  ;;  %v904_v17 = vadd.f32 %v903_v15, %v356_v8  ;;  %v716_v18 = vpop.f32.mrb[27].mxu0  ;;  %v905_v19 = vpop.f32.mrb[25].mxu1 }
 0x128   : > { %v1849_v20 = vpack.c.bf16 %v713_v4, %v711_v12  ;;  %v717_v21 = vadd.f32 %v716_v18, %v361_v11  ;;  %v906_v22 = vadd.f32 %v905_v19, %v356_v8  ;;  %v907_v23 = vpop.f32.mrb[26].mxu1  ;;  %v391_v13 = vpop.permute.xlu1 %390 }
 0x129   : > { %v908_v24 = vadd.f32 %v907_v23, %v361_v11  ;;  %v909_v25 = vpop.f32.mrb[27].mxu1 }
 0x12a   : > { %1410 = vst [vmem:[%s2273_s12 + $0xc0] sm:$0xff] %v1849_v20  ;;  %v1851_v26 = vpack.c.bf16 %v717_v21, %v715_v16  ;;  %v1850_v27 = vpack.c.bf16 %v906_v22, %v904_v17  ;;  %v910_v28 = vadd.f32 %v909_v25, %v361_v11 }
 0x12c   : > { %1412 = vst [vmem:[%s2273_s12 + $0xd0] sm:$0xff] %v1851_v26  ;;  %1411 = vst [vmem:[%s2273_s12 + $0xc8] sm:$0xff] %v1850_v27  ;;  %v1852_v30 = vpack.c.bf16 %v910_v28, %v908_v24  ;;  %v720_v31 = vpop.f32.mrb[28].mxu0 }
 0x12d   : > { %v721_v33 = vadd.f32 %v720_v31, %v366_v29  ;;  %v722_v34 = vpop.f32.mrb[29].mxu0  ;;  %v396_v31 = vpop.permute.xlu0 %395 }
 0x12e   : > { %1413 = vst [vmem:[%s2273_s12 + $0xd8] sm:$0xff] %v1852_v30  ;;  %v723_v35 = vadd.f32 %v722_v34, %v366_v29  ;;  %v724_v36 = vpop.f32.mrb[30].mxu0  ;;  %v913_v37 = vpop.f32.mrb[28].mxu1 }
 0x12f   : > { %v725_v38 = vadd.f32 %v724_v36, %v371_v32  ;;  %v914_v39 = vadd.f32 %v913_v37, %v366_v29  ;;  %v726_v40 = vpop.f32.mrb[31].mxu0  ;;  %v915_v41 = vpop.f32.mrb[29].mxu1 }
 0x130   : > { %v1853_v42 = vpack.c.bf16 %v723_v35, %v721_v33  ;;  %v727_v43 = vadd.f32 %v726_v40, %v371_v32  ;;  %v916_v44 = vadd.f32 %v915_v41, %v366_v29  ;;  %v917_v45 = vpop.f32.mrb[30].mxu1  ;;  %v401_v34 = vpop.permute.xlu1 %400 }
 0x131   : > { %v918_v46 = vadd.f32 %v917_v45, %v371_v32  ;;  %v919_v47 = vpop.f32.mrb[31].mxu1 }
 0x132   : > { %1414 = vst [vmem:[%s2273_s12 + $0xe0] sm:$0xff] %v1853_v42  ;;  %v1855_v48 = vpack.c.bf16 %v727_v43, %v725_v38  ;;  %v1854_v49 = vpack.c.bf16 %v916_v44, %v914_v39  ;;  %v920_v50 = vadd.f32 %v919_v47, %v371_v32 }
 0x134   : > { %1416 = vst [vmem:[%s2273_s12 + $0xf0] sm:$0xff] %v1855_v48  ;;  %1415 = vst [vmem:[%s2273_s12 + $0xe8] sm:$0xff] %v1854_v49  ;;  %v1856_v52 = vpack.c.bf16 %v920_v50, %v918_v46  ;;  %v730_v53 = vpop.f32.mrb[32].mxu0 }
 0x135   : > { %v731_v55 = vadd.f32 %v730_v53, %v376_v51  ;;  %v732_v56 = vpop.f32.mrb[33].mxu0  ;;  %v406_v53 = vpop.permute.xlu0 %405 }
 0x136   : > { %1417 = vst [vmem:[%s2273_s12 + $0xf8] sm:$0xff] %v1856_v52  ;;  %v733_v57 = vadd.f32 %v732_v56, %v376_v51  ;;  %v734_v58 = vpop.f32.mrb[34].mxu0  ;;  %v923_v59 = vpop.f32.mrb[32].mxu1 }
 0x137   : > { %v735_v60 = vadd.f32 %v734_v58, %v381_v54  ;;  %v924_v61 = vadd.f32 %v923_v59, %v376_v51  ;;  %v736_v62 = vpop.f32.mrb[35].mxu0  ;;  %v925_v63 = vpop.f32.mrb[33].mxu1 }
 0x138   : > { %v1857_v0 = vpack.c.bf16 %v733_v57, %v731_v55  ;;  %v737_v1 = vadd.f32 %v736_v62, %v381_v54  ;;  %v926_v2 = vadd.f32 %v925_v63, %v376_v51  ;;  %v927_v3 = vpop.f32.mrb[34].mxu1  ;;  %v411_v56 = vpop.permute.xlu1 %410 }
 0x139   : > { %v928_v5 = vadd.f32 %v927_v3, %v381_v54  ;;  %v929_v6 = vpop.f32.mrb[35].mxu1 }
 0x13a   : > { %1418 = vst [vmem:[%s2273_s12 + $0x100] sm:$0xff] %v1857_v0  ;;  %v1859_v7 = vpack.c.bf16 %v737_v1, %v735_v60  ;;  %v1858_v8 = vpack.c.bf16 %v926_v2, %v924_v61  ;;  %v930_v9 = vadd.f32 %v929_v6, %v381_v54 }
 0x13c   : > { %1420 = vst [vmem:[%s2273_s12 + $0x110] sm:$0xff] %v1859_v7  ;;  %1419 = vst [vmem:[%s2273_s12 + $0x108] sm:$0xff] %v1858_v8  ;;  %v1860_v11 = vpack.c.bf16 %v930_v9, %v928_v5  ;;  %v740_v12 = vpop.f32.mrb[36].mxu0 }
 0x13d   : > { %v741_v4 = vadd.f32 %v740_v12, %v386_v10  ;;  %v742_v14 = vpop.f32.mrb[37].mxu0  ;;  %v416_v12 = vpop.permute.xlu0 %415 }
 0x13e   : > { %1421 = vst [vmem:[%s2273_s12 + $0x118] sm:$0xff] %v1860_v11  ;;  %v743_v15 = vadd.f32 %v742_v14, %v386_v10  ;;  %v744_v16 = vpop.f32.mrb[38].mxu0  ;;  %v933_v17 = vpop.f32.mrb[36].mxu1 }
 0x13f   : > { %v745_v18 = vadd.f32 %v744_v16, %v391_v13  ;;  %v934_v19 = vadd.f32 %v933_v17, %v386_v10  ;;  %v746_v20 = vpop.f32.mrb[39].mxu0  ;;  %v935_v21 = vpop.f32.mrb[37].mxu1 }
 0x140   : > { %v1861_v22 = vpack.c.bf16 %v743_v15, %v741_v4  ;;  %v747_v23 = vadd.f32 %v746_v20, %v391_v13  ;;  %v936_v24 = vadd.f32 %v935_v21, %v386_v10  ;;  %v937_v25 = vpop.f32.mrb[38].mxu1  ;;  %v421_v14 = vpop.permute.xlu1 %420 }
 0x141   : > { %v938_v26 = vadd.f32 %v937_v25, %v391_v13  ;;  %v939_v27 = vpop.f32.mrb[39].mxu1 }
 0x142   : > { %1422 = vst [vmem:[%s2273_s12 + $0x120] sm:$0xff] %v1861_v22  ;;  %v1863_v28 = vpack.c.bf16 %v747_v23, %v745_v18  ;;  %v1862_v29 = vpack.c.bf16 %v936_v24, %v934_v19  ;;  %v940_v30 = vadd.f32 %v939_v27, %v391_v13 }
 0x144   : > { %1424 = vst [vmem:[%s2273_s12 + $0x130] sm:$0xff] %v1863_v28  ;;  %1423 = vst [vmem:[%s2273_s12 + $0x128] sm:$0xff] %v1862_v29  ;;  %v1864_v32 = vpack.c.bf16 %v940_v30, %v938_v26  ;;  %v750_v33 = vpop.f32.mrb[40].mxu0 }
 0x145   : > { %v751_v35 = vadd.f32 %v750_v33, %v396_v31  ;;  %v752_v36 = vpop.f32.mrb[41].mxu0  ;;  %v426_v33 = vpop.permute.xlu0 %425 }
 0x146   : > { %1425 = vst [vmem:[%s2273_s12 + $0x138] sm:$0xff] %v1864_v32  ;;  %v753_v37 = vadd.f32 %v752_v36, %v396_v31  ;;  %v754_v38 = vpop.f32.mrb[42].mxu0  ;;  %v943_v39 = vpop.f32.mrb[40].mxu1 }
 0x147   : > { %v755_v40 = vadd.f32 %v754_v38, %v401_v34  ;;  %v944_v41 = vadd.f32 %v943_v39, %v396_v31  ;;  %v756_v42 = vpop.f32.mrb[43].mxu0  ;;  %v945_v43 = vpop.f32.mrb[41].mxu1 }
 0x148   : > { %v1865_v44 = vpack.c.bf16 %v753_v37, %v751_v35  ;;  %v757_v45 = vadd.f32 %v756_v42, %v401_v34  ;;  %v946_v46 = vadd.f32 %v945_v43, %v396_v31  ;;  %v947_v47 = vpop.f32.mrb[42].mxu1  ;;  %v431_v36 = vpop.permute.xlu1 %430 }
 0x149   : > { %v948_v48 = vadd.f32 %v947_v47, %v401_v34  ;;  %v949_v49 = vpop.f32.mrb[43].mxu1 }
 0x14a   : > { %1426 = vst [vmem:[%s2273_s12 + $0x140] sm:$0xff] %v1865_v44  ;;  %v1867_v50 = vpack.c.bf16 %v757_v45, %v755_v40  ;;  %v1866_v51 = vpack.c.bf16 %v946_v46, %v944_v41  ;;  %v950_v52 = vadd.f32 %v949_v49, %v401_v34 }
 0x14c   : > { %1428 = vst [vmem:[%s2273_s12 + $0x150] sm:$0xff] %v1867_v50  ;;  %1427 = vst [vmem:[%s2273_s12 + $0x148] sm:$0xff] %v1866_v51  ;;  %v1868_v54 = vpack.c.bf16 %v950_v52, %v948_v48  ;;  %v760_v55 = vpop.f32.mrb[44].mxu0 }
 0x14d   : > { %v761_v57 = vadd.f32 %v760_v55, %v406_v53  ;;  %v762_v58 = vpop.f32.mrb[45].mxu0  ;;  %v436_v55 = vpop.permute.xlu0 %435 }
 0x14e   : > { %1429 = vst [vmem:[%s2273_s12 + $0x158] sm:$0xff] %v1868_v54  ;;  %v763_v59 = vadd.f32 %v762_v58, %v406_v53  ;;  %v764_v60 = vpop.f32.mrb[46].mxu0  ;;  %v953_v61 = vpop.f32.mrb[44].mxu1 }
 0x14f   : > { %v765_v62 = vadd.f32 %v764_v60, %v411_v56  ;;  %v954_v63 = vadd.f32 %v953_v61, %v406_v53  ;;  %v766_v0 = vpop.f32.mrb[47].mxu0  ;;  %v955_v1 = vpop.f32.mrb[45].mxu1 }
 0x150   : > { %v1869_v2 = vpack.c.bf16 %v763_v59, %v761_v57  ;;  %v767_v3 = vadd.f32 %v766_v0, %v411_v56  ;;  %v956_v5 = vadd.f32 %v955_v1, %v406_v53  ;;  %v957_v6 = vpop.f32.mrb[46].mxu1  ;;  %v441_v58 = vpop.permute.xlu1 %440 }
 0x151   : > { %v958_v7 = vadd.f32 %v957_v6, %v411_v56  ;;  %v959_v8 = vpop.f32.mrb[47].mxu1 }
 0x152   : > { %1430 = vst [vmem:[%s2273_s12 + $0x160] sm:$0xff] %v1869_v2  ;;  %v1871_v9 = vpack.c.bf16 %v767_v3, %v765_v62  ;;  %v1870_v10 = vpack.c.bf16 %v956_v5, %v954_v63  ;;  %v960_v11 = vadd.f32 %v959_v8, %v411_v56 }
 0x154   : > { %1432 = vst [vmem:[%s2273_s12 + $0x170] sm:$0xff] %v1871_v9  ;;  %1431 = vst [vmem:[%s2273_s12 + $0x168] sm:$0xff] %v1870_v10  ;;  %v1872_v13 = vpack.c.bf16 %v960_v11, %v958_v7  ;;  %v770_v4 = vpop.f32.mrb[48].mxu0 }
 0x155   : > { %v771_v15 = vadd.f32 %v770_v4, %v416_v12  ;;  %v772_v16 = vpop.f32.mrb[49].mxu0  ;;  %v446_v4 = vpop.permute.xlu0 %445 }
 0x156   : > { %1433 = vst [vmem:[%s2273_s12 + $0x178] sm:$0xff] %v1872_v13  ;;  %v773_v17 = vadd.f32 %v772_v16, %v416_v12  ;;  %v774_v18 = vpop.f32.mrb[50].mxu0  ;;  %v963_v19 = vpop.f32.mrb[48].mxu1 }
 0x157   : > { %v775_v20 = vadd.f32 %v774_v18, %v421_v14  ;;  %v964_v21 = vadd.f32 %v963_v19, %v416_v12  ;;  %v776_v22 = vpop.f32.mrb[51].mxu0  ;;  %v965_v23 = vpop.f32.mrb[49].mxu1 }
 0x158   : > { %v1873_v24 = vpack.c.bf16 %v773_v17, %v771_v15  ;;  %v777_v25 = vadd.f32 %v776_v22, %v421_v14  ;;  %v966_v26 = vadd.f32 %v965_v23, %v416_v12  ;;  %v967_v27 = vpop.f32.mrb[50].mxu1  ;;  %v451_v16 = vpop.permute.xlu1 %450 }
 0x159   : > { %v968_v28 = vadd.f32 %v967_v27, %v421_v14  ;;  %v969_v29 = vpop.f32.mrb[51].mxu1 }
 0x15a   : > { %1434 = vst [vmem:[%s2273_s12 + $0x180] sm:$0xff] %v1873_v24  ;;  %v1875_v30 = vpack.c.bf16 %v777_v25, %v775_v20  ;;  %v1874_v31 = vpack.c.bf16 %v966_v26, %v964_v21  ;;  %v970_v32 = vadd.f32 %v969_v29, %v421_v14 }
 0x15c   : > { %1436 = vst [vmem:[%s2273_s12 + $0x190] sm:$0xff] %v1875_v30  ;;  %1435 = vst [vmem:[%s2273_s12 + $0x188] sm:$0xff] %v1874_v31  ;;  %v1876_v34 = vpack.c.bf16 %v970_v32, %v968_v28  ;;  %v780_v35 = vpop.f32.mrb[52].mxu0 }
 0x15d   : > { %v781_v37 = vadd.f32 %v780_v35, %v426_v33  ;;  %v782_v38 = vpop.f32.mrb[53].mxu0 }
 0x15e   : > { %1437 = vst [vmem:[%s2273_s12 + $0x198] sm:$0xff] %v1876_v34  ;;  %v783_v39 = vadd.f32 %v782_v38, %v426_v33  ;;  %v784_v40 = vpop.f32.mrb[54].mxu0  ;;  %v973_v41 = vpop.f32.mrb[52].mxu1  ;;  %v1479_v38 = vld [vmem:[%s2273_s12 + $0x10] sm:$0xff] (%p2047_p3) }
 0x15f   : > { %v785_v42 = vadd.f32 %v784_v40, %v431_v36  ;;  %v974_v43 = vadd.f32 %v973_v41, %v426_v33  ;;  %v786_v44 = vpop.f32.mrb[55].mxu0  ;;  %v975_v45 = vpop.f32.mrb[53].mxu1  ;;  %v1483_v40 = vld [vmem:[%s2273_s12 + $0x20] sm:$0xff] (%p2047_p3)  ;;  %v1485_v41 = vld [vmem:[%s2273_s12 + $0x28] sm:$0xff] (%p2047_p3)  ;;  %1480 = vst [vmem:[%s2348_s7 + $0x40] sm:$0xff] (%p2047_p3), %v1479_v38 }
 0x160   : > { %v1877_v46 = vpack.c.bf16 %v783_v39, %v781_v37  ;;  %v787_v47 = vadd.f32 %v786_v44, %v431_v36  ;;  %v976_v48 = vadd.f32 %v975_v45, %v426_v33  ;;  %v977_v49 = vpop.f32.mrb[54].mxu1  ;;  %v1477_v37 = vld [vmem:[%s2273_s12 + $0x8] sm:$0xff] (%p2047_p3)  ;;  %v1481_v39 = vld [vmem:[%s2273_s12 + $0x18] sm:$0xff] (%p2047_p3)  ;;  %1484 = vst [vmem:[%s2348_s7 + $0x80] sm:$0xff] (%p2047_p3), %v1483_v40  ;;  %1486 = vst [vmem:[%s2348_s7 + $0x88] sm:$0xff] (%p2047_p3), %v1485_v41 }
 0x161   : > { %v978_v50 = vadd.f32 %v977_v49, %v431_v36  ;;  %v979_v51 = vpop.f32.mrb[55].mxu1  ;;  %1478 = vst [vmem:[%s2348_s7 + $0x8] sm:$0xff] (%p2047_p3), %v1477_v37  ;;  %1482 = vst [vmem:[%s2348_s7 + $0x48] sm:$0xff] (%p2047_p3), %v1481_v39  ;;  %v1491_v44 = vld [vmem:[%s2273_s12 + $0x40] sm:$0xff] (%p2047_p3)  ;;  %v1493_v45 = vld [vmem:[%s2273_s12 + $0x48] sm:$0xff] (%p2047_p3) }
 0x162   : > { %1438 = vst [vmem:[%s2273_s12 + $0x1a0] sm:$0xff] %v1877_v46  ;;  %v1879_v52 = vpack.c.bf16 %v787_v47, %v785_v42  ;;  %v1878_v53 = vpack.c.bf16 %v976_v48, %v974_v43  ;;  %v980_v54 = vadd.f32 %v979_v51, %v431_v36  ;;  %v1475_v36 = vld [vmem:[%s2273_s12] sm:$0xff] (%p2047_p3)  ;;  %v1487_v42 = vld [vmem:[%s2273_s12 + $0x30] sm:$0xff] (%p2047_p3)  ;;  %v1489_v43 = vld [vmem:[%s2273_s12 + $0x38] sm:$0xff] (%p2047_p3) }
 0x163   : > { %1476 = vst [vmem:[%s2348_s7] sm:$0xff] (%p2047_p3), %v1475_v36  ;;  %1488 = vst [vmem:[%s2348_s7 + $0xc0] sm:$0xff] (%p2047_p3), %v1487_v42  ;;  %v1495_v46 = vld [vmem:[%s2273_s12 + $0x50] sm:$0xff] (%p2047_p3)  ;;  %v1497_v47 = vld [vmem:[%s2273_s12 + $0x58] sm:$0xff] (%p2047_p3) }
 0x164   : > { %1440 = vst [vmem:[%s2273_s12 + $0x1b0] sm:$0xff] %v1879_v52  ;;  %1439 = vst [vmem:[%s2273_s12 + $0x1a8] sm:$0xff] %v1878_v53  ;;  %v1880_v56 = vpack.c.bf16 %v980_v54, %v978_v50  ;;  %v790_v57 = vpop.f32.mrb[56].mxu0  ;;  %v1499_v48 = vld [vmem:[%s2273_s12 + $0x60] sm:$0xff] (%p2047_p3)  ;;  %v1501_v49 = vld [vmem:[%s2273_s12 + $0x68] sm:$0xff] (%p2047_p3) }
 0x165   : > { %v791_v59 = vadd.f32 %v790_v57, %v436_v55  ;;  %v792_v60 = vpop.f32.mrb[57].mxu0  ;;  %1490 = vst [vmem:[%s2348_s7 + $0xc8] sm:$0xff] (%p2047_p3), %v1489_v43  ;;  %1492 = vst [vmem:[%s2348_s7 + $0x100] sm:$0xff] (%p2047_p3), %v1491_v44  ;;  %v1503_v50 = vld [vmem:[%s2273_s12 + $0x70] sm:$0xff] (%p2047_p3)  ;;  %v1505_v51 = vld [vmem:[%s2273_s12 + $0x78] sm:$0xff] (%p2047_p3) }
 0x166   : > { %1441 = vst [vmem:[%s2273_s12 + $0x1b8] sm:$0xff] %v1880_v56  ;;  %v793_v61 = vadd.f32 %v792_v60, %v436_v55  ;;  %v794_v62 = vpop.f32.mrb[58].mxu0  ;;  %v983_v63 = vpop.f32.mrb[56].mxu1  ;;  %1494 = vst [vmem:[%s2348_s7 + $0x108] sm:$0xff] (%p2047_p3), %v1493_v45  ;;  %v1507_v52 = vld [vmem:[%s2273_s12 + $0x80] sm:$0xff] (%p2047_p3)  ;;  %v1509_v53 = vld [vmem:[%s2273_s12 + $0x88] sm:$0xff] (%p2047_p3) }
 0x167   : > { %v795_v0 = vadd.f32 %v794_v62, %v441_v58  ;;  %v984_v1 = vadd.f32 %v983_v63, %v436_v55  ;;  %v796_v2 = vpop.f32.mrb[59].mxu0  ;;  %v985_v3 = vpop.f32.mrb[57].mxu1  ;;  %1496 = vst [vmem:[%s2348_s7 + $0x140] sm:$0xff] (%p2047_p3), %v1495_v46  ;;  %1498 = vst [vmem:[%s2348_s7 + $0x148] sm:$0xff] (%p2047_p3), %v1497_v47  ;;  %v1511_v54 = vld [vmem:[%s2273_s12 + $0x90] sm:$0xff] (%p2047_p3)  ;;  %v1515_v56 = vld [vmem:[%s2273_s12 + $0xa0] sm:$0xff] (%p2047_p3) }
 0x168   : > { %v1881_v5 = vpack.c.bf16 %v793_v61, %v791_v59  ;;  %v797_v6 = vadd.f32 %v796_v2, %v441_v58  ;;  %v986_v7 = vadd.f32 %v985_v3, %v436_v55  ;;  %v987_v8 = vpop.f32.mrb[58].mxu1  ;;  %1500 = vst [vmem:[%s2348_s7 + $0x180] sm:$0xff] (%p2047_p3), %v1499_v48  ;;  %1502 = vst [vmem:[%s2348_s7 + $0x188] sm:$0xff] (%p2047_p3), %v1501_v49  ;;  %v1513_v55 = vld [vmem:[%s2273_s12 + $0x98] sm:$0xff] (%p2047_p3)  ;;  %v1517_v57 = vld [vmem:[%s2273_s12 + $0xa8] sm:$0xff] (%p2047_p3) }
 0x169   : > { %v988_v9 = vadd.f32 %v987_v8, %v441_v58  ;;  %v989_v10 = vpop.f32.mrb[59].mxu1  ;;  %1504 = vst [vmem:[%s2348_s7 + $0x1c0] sm:$0xff] (%p2047_p3), %v1503_v50  ;;  %1506 = vst [vmem:[%s2348_s7 + $0x1c8] sm:$0xff] (%p2047_p3), %v1505_v51  ;;  %v1521_v59 = vld [vmem:[%s2273_s12 + $0xb8] sm:$0xff] (%p2047_p3)  ;;  %v1523_v60 = vld [vmem:[%s2273_s12 + $0xc0] sm:$0xff] (%p2047_p3) }
 0x16a   : > { %1442 = vst [vmem:[%s2273_s12 + $0x1c0] sm:$0xff] %v1881_v5  ;;  %v1883_v11 = vpack.c.bf16 %v797_v6, %v795_v0  ;;  %v1882_v12 = vpack.c.bf16 %v986_v7, %v984_v1  ;;  %v990_v13 = vadd.f32 %v989_v10, %v441_v58  ;;  %1508 = vst [vmem:[%s2348_s7 + $0x200] sm:$0xff] (%p2047_p3), %v1507_v52  ;;  %v1519_v58 = vld [vmem:[%s2273_s12 + $0xb0] sm:$0xff] (%p2047_p3)  ;;  %v1525_v61 = vld [vmem:[%s2273_s12 + $0xc8] sm:$0xff] (%p2047_p3) }
 0x16b   : > { %1510 = vst [vmem:[%s2348_s7 + $0x208] sm:$0xff] (%p2047_p3), %v1509_v53  ;;  %1512 = vst [vmem:[%s2348_s7 + $0x240] sm:$0xff] (%p2047_p3), %v1511_v54  ;;  %v1527_v62 = vld [vmem:[%s2273_s12 + $0xd0] sm:$0xff] (%p2047_p3)  ;;  %v1529_v63 = vld [vmem:[%s2273_s12 + $0xd8] sm:$0xff] (%p2047_p3) }
 0x16c   : > { %1444 = vst [vmem:[%s2273_s12 + $0x1d0] sm:$0xff] %v1883_v11  ;;  %1443 = vst [vmem:[%s2273_s12 + $0x1c8] sm:$0xff] %v1882_v12  ;;  %v1884_v14 = vpack.c.bf16 %v990_v13, %v988_v9  ;;  %v800_v15 = vpop.f32.mrb[60].mxu0  ;;  %v1531_v0 = vld [vmem:[%s2273_s12 + $0xe0] sm:$0xff] (%p2047_p3)  ;;  %v1533_v1 = vld [vmem:[%s2273_s12 + $0xe8] sm:$0xff] (%p2047_p3) }
 0x16d   : > { %v801_v17 = vadd.f32 %v800_v15, %v446_v4  ;;  %v802_v18 = vpop.f32.mrb[61].mxu0  ;;  %1514 = vst [vmem:[%s2348_s7 + $0x248] sm:$0xff] (%p2047_p3), %v1513_v55  ;;  %1516 = vst [vmem:[%s2348_s7 + $0x280] sm:$0xff] (%p2047_p3), %v1515_v56  ;;  %v1535_v2 = vld [vmem:[%s2273_s12 + $0xf0] sm:$0xff] (%p2047_p3)  ;;  %v1537_v3 = vld [vmem:[%s2273_s12 + $0xf8] sm:$0xff] (%p2047_p3) }
 0x16e   : > { %1445 = vst [vmem:[%s2273_s12 + $0x1d8] sm:$0xff] %v1884_v14  ;;  %v803_v19 = vadd.f32 %v802_v18, %v446_v4  ;;  %v804_v20 = vpop.f32.mrb[62].mxu0  ;;  %v993_v21 = vpop.f32.mrb[60].mxu1  ;;  %1518 = vst [vmem:[%s2348_s7 + $0x288] sm:$0xff] (%p2047_p3), %v1517_v57  ;;  %v1539_v5 = vld [vmem:[%s2273_s12 + $0x100] sm:$0xff] (%p2047_p3)  ;;  %v1541_v6 = vld [vmem:[%s2273_s12 + $0x108] sm:$0xff] (%p2047_p3) }
 0x16f   : > { %v805_v22 = vadd.f32 %v804_v20, %v451_v16  ;;  %v994_v23 = vadd.f32 %v993_v21, %v446_v4  ;;  %v806_v24 = vpop.f32.mrb[63].mxu0  ;;  %v995_v25 = vpop.f32.mrb[61].mxu1  ;;  %1520 = vst [vmem:[%s2348_s7 + $0x2c0] sm:$0xff] (%p2047_p3), %v1519_v58  ;;  %1522 = vst [vmem:[%s2348_s7 + $0x2c8] sm:$0xff] (%p2047_p3), %v1521_v59  ;;  %v1543_v7 = vld [vmem:[%s2273_s12 + $0x110] sm:$0xff] (%p2047_p3)  ;;  %v1545_v8 = vld [vmem:[%s2273_s12 + $0x118] sm:$0xff] (%p2047_p3) }
 0x170   : > { %v1885_v26 = vpack.c.bf16 %v803_v19, %v801_v17  ;;  %v807_v27 = vadd.f32 %v806_v24, %v451_v16  ;;  %v996_v28 = vadd.f32 %v995_v25, %v446_v4  ;;  %v997_v29 = vpop.f32.mrb[62].mxu1  ;;  %1456 = sbr.rel (!%p2047_p3) target bundleno = 390 (0x186), region = 36  ;;  %1524 = vst [vmem:[%s2348_s7 + $0x300] sm:$0xff] (%p2047_p3), %v1523_v60  ;;  %1526 = vst [vmem:[%s2348_s7 + $0x308] sm:$0xff] (%p2047_p3), %v1525_v61  ;;  %v1547_v9 = vld [vmem:[%s2273_s12 + $0x120] sm:$0xff] (%p2047_p3)  ;;  %v1549_v10 = vld [vmem:[%s2273_s12 + $0x128] sm:$0xff] (%p2047_p3) }
 0x171   : > { %v998_v30 = vadd.f32 %v997_v29, %v451_v16  ;;  %v999_v31 = vpop.f32.mrb[63].mxu1  ;;  %1528 = vst [vmem:[%s2348_s7 + $0x340] sm:$0xff] (%p2047_p3), %v1527_v62  ;;  %1530 = vst [vmem:[%s2348_s7 + $0x348] sm:$0xff] (%p2047_p3), %v1529_v63  ;;  %v1551_v11 = vld [vmem:[%s2273_s12 + $0x130] sm:$0xff] (%p2047_p3)  ;;  %v1553_v12 = vld [vmem:[%s2273_s12 + $0x138] sm:$0xff] (%p2047_p3) }
 0x172   : > { %1446 = vst [vmem:[%s2273_s12 + $0x1e0] sm:$0xff] %v1885_v26  ;;  %v1887_v32 = vpack.c.bf16 %v807_v27, %v805_v22  ;;  %v1886_v33 = vpack.c.bf16 %v996_v28, %v994_v23  ;;  %v1000_v34 = vadd.f32 %v999_v31, %v451_v16  ;;  %1532 = vst [vmem:[%s2348_s7 + $0x380] sm:$0xff] (%p2047_p3), %v1531_v0  ;;  %v1555_v13 = vld [vmem:[%s2273_s12 + $0x140] sm:$0xff] (%p2047_p3)  ;;  %v1557_v4 = vld [vmem:[%s2273_s12 + $0x148] sm:$0xff] (%p2047_p3) }
 0x173   : > { %1534 = vst [vmem:[%s2348_s7 + $0x388] sm:$0xff] (%p2047_p3), %v1533_v1  ;;  %1536 = vst [vmem:[%s2348_s7 + $0x3c0] sm:$0xff] (%p2047_p3), %v1535_v2  ;;  %v1559_v14 = vld [vmem:[%s2273_s12 + $0x150] sm:$0xff] (%p2047_p3)  ;;  %v1561_v15 = vld [vmem:[%s2273_s12 + $0x158] sm:$0xff] (%p2047_p3) }
 0x174   : > { %1448 = vst [vmem:[%s2273_s12 + $0x1f0] sm:$0xff] %v1887_v32  ;;  %1447 = vst [vmem:[%s2273_s12 + $0x1e8] sm:$0xff] %v1886_v33  ;;  %v1888_v35 = vpack.c.bf16 %v1000_v34, %v998_v30  ;;  %v1563_v16 = vld [vmem:[%s2273_s12 + $0x160] sm:$0xff] (%p2047_p3)  ;;  %v1565_v17 = vld [vmem:[%s2273_s12 + $0x168] sm:$0xff] (%p2047_p3) }
 0x175   : > { %1538 = vst [vmem:[%s2348_s7 + $0x3c8] sm:$0xff] (%p2047_p3), %v1537_v3  ;;  %1540 = vst [vmem:[%s2348_s7 + $0x400] sm:$0xff] (%p2047_p3), %v1539_v5  ;;  %v1567_v18 = vld [vmem:[%s2273_s12 + $0x170] sm:$0xff] (%p2047_p3)  ;;  %v1569_v19 = vld [vmem:[%s2273_s12 + $0x178] sm:$0xff] (%p2047_p3) }
 0x176   : > { %1449 = vst [vmem:[%s2273_s12 + $0x1f8] sm:$0xff] %v1888_v35  ;;  %1542 = vst [vmem:[%s2348_s7 + $0x408] sm:$0xff] (%p2047_p3), %v1541_v6  ;;  %v1571_v20 = vld [vmem:[%s2273_s12 + $0x180] sm:$0xff] (%p2047_p3)  ;;  %v1573_v21 = vld [vmem:[%s2273_s12 + $0x188] sm:$0xff] (%p2047_p3) }
 0x177   : > { %1544 = vst [vmem:[%s2348_s7 + $0x440] sm:$0xff] %v1543_v7  ;;  %1546 = vst [vmem:[%s2348_s7 + $0x448] sm:$0xff] %v1545_v8  ;;  %v1575_v22 = vld [vmem:[%s2273_s12 + $0x190] sm:$0xff]  ;;  %v1577_v23 = vld [vmem:[%s2273_s12 + $0x198] sm:$0xff] }
 0x178   : > { %1548 = vst [vmem:[%s2348_s7 + $0x480] sm:$0xff] %v1547_v9  ;;  %1550 = vst [vmem:[%s2348_s7 + $0x488] sm:$0xff] %v1549_v10  ;;  %v1579_v24 = vld [vmem:[%s2273_s12 + $0x1a0] sm:$0xff]  ;;  %v1581_v25 = vld [vmem:[%s2273_s12 + $0x1a8] sm:$0xff] }
 0x179   : > { %1552 = vst [vmem:[%s2348_s7 + $0x4c0] sm:$0xff] %v1551_v11  ;;  %1554 = vst [vmem:[%s2348_s7 + $0x4c8] sm:$0xff] %v1553_v12  ;;  %v1583_v26 = vld [vmem:[%s2273_s12 + $0x1b0] sm:$0xff]  ;;  %v1585_v27 = vld [vmem:[%s2273_s12 + $0x1b8] sm:$0xff] }
 0x17a   : > { %1556 = vst [vmem:[%s2348_s7 + $0x500] sm:$0xff] %v1555_v13  ;;  %1558 = vst [vmem:[%s2348_s7 + $0x508] sm:$0xff] %v1557_v4  ;;  %v1587_v28 = vld [vmem:[%s2273_s12 + $0x1c0] sm:$0xff]  ;;  %v1589_v29 = vld [vmem:[%s2273_s12 + $0x1c8] sm:$0xff] }
 0x17b   : > { %1560 = vst [vmem:[%s2348_s7 + $0x540] sm:$0xff] %v1559_v14  ;;  %1562 = vst [vmem:[%s2348_s7 + $0x548] sm:$0xff] %v1561_v15  ;;  %v1591_v30 = vld [vmem:[%s2273_s12 + $0x1d0] sm:$0xff]  ;;  %v1593_v31 = vld [vmem:[%s2273_s12 + $0x1d8] sm:$0xff] }
 0x17c   : > { %1564 = vst [vmem:[%s2348_s7 + $0x580] sm:$0xff] %v1563_v16  ;;  %1566 = vst [vmem:[%s2348_s7 + $0x588] sm:$0xff] %v1565_v17  ;;  %v1595_v32 = vld [vmem:[%s2273_s12 + $0x1e0] sm:$0xff]  ;;  %v1597_v33 = vld [vmem:[%s2273_s12 + $0x1e8] sm:$0xff] }
 0x17d   : > { %1568 = vst [vmem:[%s2348_s7 + $0x5c0] sm:$0xff] %v1567_v18  ;;  %1570 = vst [vmem:[%s2348_s7 + $0x5c8] sm:$0xff] %v1569_v19  ;;  %v1599_v34 = vld [vmem:[%s2273_s12 + $0x1f0] sm:$0xff]  ;;  %v1601_v35 = vld [vmem:[%s2273_s12 + $0x1f8] sm:$0xff] }
 0x17e   : > { %1572 = vst [vmem:[%s2348_s7 + $0x600] sm:$0xff] %v1571_v20  ;;  %1574 = vst [vmem:[%s2348_s7 + $0x608] sm:$0xff] %v1573_v21 }
 0x17f   : > { %1576 = vst [vmem:[%s2348_s7 + $0x640] sm:$0xff] %v1575_v22  ;;  %1578 = vst [vmem:[%s2348_s7 + $0x648] sm:$0xff] %v1577_v23 }
 0x180   : > { %1580 = vst [vmem:[%s2348_s7 + $0x680] sm:$0xff] %v1579_v24  ;;  %1582 = vst [vmem:[%s2348_s7 + $0x688] sm:$0xff] %v1581_v25 }
 0x181   : > { %1584 = vst [vmem:[%s2348_s7 + $0x6c0] sm:$0xff] %v1583_v26  ;;  %1586 = vst [vmem:[%s2348_s7 + $0x6c8] sm:$0xff] %v1585_v27 }
 0x182   : > { %1588 = vst [vmem:[%s2348_s7 + $0x700] sm:$0xff] %v1587_v28  ;;  %1590 = vst [vmem:[%s2348_s7 + $0x708] sm:$0xff] %v1589_v29 }
 0x183   : > { %1592 = vst [vmem:[%s2348_s7 + $0x740] sm:$0xff] %v1591_v30  ;;  %1594 = vst [vmem:[%s2348_s7 + $0x748] sm:$0xff] %v1593_v31 }
 0x184   : > { %1596 = vst [vmem:[%s2348_s7 + $0x780] sm:$0xff] %v1595_v32  ;;  %1598 = vst [vmem:[%s2348_s7 + $0x788] sm:$0xff] %v1597_v33 }
 0x185   : > { %1600 = vst [vmem:[%s2348_s7 + $0x7c0] sm:$0xff] %v1599_v34  ;;  %1602 = vst [vmem:[%s2348_s7 + $0x7c8] sm:$0xff] %v1601_v35 }
 0x186 PF: > { %s13_s16 = sadd.s32 1, %s1990_s16   ;;  %s2495_s12 = smov %s1978_s13 }
 0x187   : > { %p10_p9 = scmp.ge.s32.totalorder %s13_s16, 6   ;;  %s2496_s13 = smov %s2056_s22 }
 0x188   : > { %s2497_s14 = smov %s1986_s15  ;;  %s2498_s15 = smov %s2500_s18 }
 0x189   :  { %12 = sbr.rel (!%p10_p9) target bundleno = 3 (0x3), region = 91 }

// kernel: unit_gcn_forward.3
= control target key start
LH: loop header
LB: loop body
LE: loop exit
PB: predicated region body
PF: predicated region fallthrough
CT: control target
= control target key end

     0   :  { %s2296_s15 = smov 0   ;;  %s2298_s16 = smov 0   ;;  %s2693_s0 = inlined_call_operand.vmem [shape: bf16[3,1024,128], index: 0, kind: input, shape index: {}]   ;;  %s2694_s1 = inlined_call_operand.vmem [shape: bf16[3,8,128,128], index: 1, kind: input, shape index: {}]   ;;  %s2695_s2 = inlined_call_operand.vmem [shape: bf16[1024,128], index: 2, kind: input, shape index: {}]   ;;  %s2696_s3 = inlined_call_operand.vmem [shape: f32[1024,1], index: 3, kind: input, shape index: {}]   ;;  %s2697_s4 = inlined_call_operand.vmem [shape: f32[1024,128], index: 4, kind: output, shape index: {}]  }
   0x1   :  { %s2300_s17 = smov 0   ;;  %s2302_s18 = smov 0  }
   0x2   :  { %s2304_s19 = smov 0  }
   0x3 LB: > { %s26_s20 = sadd.s32 1, %s2264_s18  ;;  %p42_p1 = scmp.ne.s32.totalorder %s2256_s16, %s2252_s15  ;;  %s2268_s19 = sphi %s2304_s19, %s14_s19   ;;  %s2264_s18 = sphi %s2302_s18, %s2702_s18   ;;  %s2260_s17 = sphi %s2300_s17, %s2701_s17   ;;  %s2256_s16 = sphi %s2298_s16, %s2700_s16   ;;  %s2252_s15 = sphi %s2296_s15, %s2699_s15  }
   0x4   : > { %p28_p0 = scmp.ge.s32.totalorder %s26_s20, 8  ;;  %p43_p2 = scmp.eq.s32.totalorder %s2268_s19, 0 }
   0x5   : > { %s35_s23 = sadd.s32 1, %s2256_s16  ;;  %p1777_p5 = scmp.ge.s32.totalorder %s2268_s19, 8 }
   0x6   : > { %s2704_s20 = smov (%p28_p0, %s26_s20), 0  ;;  %p2327_p3 = por %p43_p2, %p42_p1 }
   0x7   : > { %s30_s22 = ssub.s32 %s2264_s18, %s2704_s20  ;;  %176 = sbr.rel (%p1777_p5) target bundleno = 48 (0x30), region = 16 }
   0x8   : > { %p33_p4 = scmp.eq.s32.totalorder %s30_s22, 0 }
   0xa   : > { %s2335_s24 = scalar_select %p33_p4, %s2256_s16, %s35_s23  }
   0xe   : > { %179 = sbr.rel (!%p2327_p3) target bundleno = 31 (0x1f), region = 20  ;;  %s181_s25 = sand.u32 (%p2327_p3), 1, %s2256_s16  }
   0xf   : > { %s1903_s26 = sshll.u32 (%p2327_p3), %s2264_s18, 6  ;;  %s2136_s27 = smul.u32 (%p2327_p3), 192, %s181_s25 }
  0x10   : > { %s2345_s30 = scalar_lea.vmem (%p2327_p3), %s2693_s0, %s1903_s26 }
  0x11   : > { %v203_v0 = vld [vmem:[%s2345_s30] sm:$0xff] (%p2327_p3)   ;;  %v207_v1 = vld [vmem:[%s2345_s30 + $0x8] sm:$0xff] (%p2327_p3)   ;;  %v211_v2 = vld [vmem:[%s2345_s30 + $0x10] sm:$0xff] (%p2327_p3)   ;;  %s2353_s5 = scalar_lea.vmem (%p2327_p3), [#allocation2], %s2136_s27 }
  0x12   : > { %v215_v3 = vld [vmem:[%s2345_s30 + $0x18] sm:$0xff] (%p2327_p3)   ;;  %v219_v4 = vld [vmem:[%s2345_s30 + $0x20] sm:$0xff] (%p2327_p3)   ;;  %v223_v5 = vld [vmem:[%s2345_s30 + $0x28] sm:$0xff] (%p2327_p3)   ;;  %204 = vst [vmem:[%s2353_s5] sm:$0xff] (%p2327_p3), %v203_v0  }
  0x13   : > { %208 = vst [vmem:[%s2353_s5 + $0x8] sm:$0xff] (%p2327_p3), %v207_v1   ;;  %212 = vst [vmem:[%s2353_s5 + $0x10] sm:$0xff] (%p2327_p3), %v211_v2   ;;  %v227_v6 = vld [vmem:[%s2345_s30 + $0x30] sm:$0xff] (%p2327_p3)   ;;  %v231_v7 = vld [vmem:[%s2345_s30 + $0x38] sm:$0xff] (%p2327_p3)  }
  0x14   : > { %216 = vst [vmem:[%s2353_s5 + $0x18] sm:$0xff] (%p2327_p3), %v215_v3   ;;  %220 = vst [vmem:[%s2353_s5 + $0x20] sm:$0xff] (%p2327_p3), %v219_v4   ;;  %v235_v8 = vld [vmem:[%s2345_s30 + $0x200] sm:$0xff] (%p2327_p3)   ;;  %v239_v9 = vld [vmem:[%s2345_s30 + $0x208] sm:$0xff] (%p2327_p3)  }
  0x15   : > { %224 = vst [vmem:[%s2353_s5 + $0x28] sm:$0xff] %v223_v5   ;;  %228 = vst [vmem:[%s2353_s5 + $0x30] sm:$0xff] %v227_v6   ;;  %v243_v10 = vld [vmem:[%s2345_s30 + $0x210] sm:$0xff]   ;;  %v247_v11 = vld [vmem:[%s2345_s30 + $0x218] sm:$0xff]  }
  0x16   : > { %232 = vst [vmem:[%s2353_s5 + $0x38] sm:$0xff] %v231_v7   ;;  %236 = vst [vmem:[%s2353_s5 + $0x40] sm:$0xff] %v235_v8   ;;  %v251_v12 = vld [vmem:[%s2345_s30 + $0x220] sm:$0xff]   ;;  %v255_v13 = vld [vmem:[%s2345_s30 + $0x228] sm:$0xff]  }
  0x17   : > { %240 = vst [vmem:[%s2353_s5 + $0x48] sm:$0xff] %v239_v9   ;;  %244 = vst [vmem:[%s2353_s5 + $0x50] sm:$0xff] %v243_v10   ;;  %v259_v14 = vld [vmem:[%s2345_s30 + $0x230] sm:$0xff]   ;;  %v263_v15 = vld [vmem:[%s2345_s30 + $0x238] sm:$0xff]  }
  0x18   : > { %248 = vst [vmem:[%s2353_s5 + $0x58] sm:$0xff] %v247_v11   ;;  %252 = vst [vmem:[%s2353_s5 + $0x60] sm:$0xff] %v251_v12   ;;  %v267_v16 = vld [vmem:[%s2345_s30 + $0x400] sm:$0xff]   ;;  %v271_v17 = vld [vmem:[%s2345_s30 + $0x408] sm:$0xff]  }
  0x19   : > { %256 = vst [vmem:[%s2353_s5 + $0x68] sm:$0xff] %v255_v13   ;;  %260 = vst [vmem:[%s2353_s5 + $0x70] sm:$0xff] %v259_v14   ;;  %v275_v18 = vld [vmem:[%s2345_s30 + $0x410] sm:$0xff]   ;;  %v279_v19 = vld [vmem:[%s2345_s30 + $0x418] sm:$0xff]  }
  0x1a   : > { %264 = vst [vmem:[%s2353_s5 + $0x78] sm:$0xff] %v263_v15   ;;  %268 = vst [vmem:[%s2353_s5 + $0x80] sm:$0xff] %v267_v16   ;;  %v283_v20 = vld [vmem:[%s2345_s30 + $0x420] sm:$0xff]   ;;  %v287_v21 = vld [vmem:[%s2345_s30 + $0x428] sm:$0xff]  }
  0x1b   : > { %272 = vst [vmem:[%s2353_s5 + $0x88] sm:$0xff] %v271_v17   ;;  %276 = vst [vmem:[%s2353_s5 + $0x90] sm:$0xff] %v275_v18   ;;  %v291_v22 = vld [vmem:[%s2345_s30 + $0x430] sm:$0xff]   ;;  %v295_v23 = vld [vmem:[%s2345_s30 + $0x438] sm:$0xff]  }
  0x1c   : > { %280 = vst [vmem:[%s2353_s5 + $0x98] sm:$0xff] %v279_v19   ;;  %284 = vst [vmem:[%s2353_s5 + $0xa0] sm:$0xff] %v283_v20  }
  0x1d   : > { %288 = vst [vmem:[%s2353_s5 + $0xa8] sm:$0xff] %v287_v21   ;;  %292 = vst [vmem:[%s2353_s5 + $0xb0] sm:$0xff] %v291_v22  }
  0x1e   : > { %296 = vst [vmem:[%s2353_s5 + $0xb8] sm:$0xff] %v295_v23  }
  0x1f PF: > { %417 = sbr.rel (!%p2327_p3) target bundleno = 48 (0x30), region = 61  ;;  %s419_s6 = sand.u32 (%p2327_p3), 1, %s2256_s16  }
  0x20   : > { %s1904_s7 = sshll.u32 (%p2327_p3), %s2264_s18, 6  ;;  %s2137_s8 = smul.u32 (%p2327_p3), 192, %s419_s6 }
  0x21   : > { %s2404_s11 = scalar_lea.vmem (%p2327_p3), %s2694_s1, %s1904_s7 }
  0x22   : > { %v440_v24 = vld [vmem:[%s2404_s11] sm:$0xff] (%p2327_p3)   ;;  %v444_v25 = vld [vmem:[%s2404_s11 + $0x8] sm:$0xff] (%p2327_p3)   ;;  %v448_v26 = vld [vmem:[%s2404_s11 + $0x10] sm:$0xff] (%p2327_p3)   ;;  %s2412_s12 = scalar_lea.vmem (%p2327_p3), [#allocation3], %s2137_s8 }
  0x23   : > { %v452_v27 = vld [vmem:[%s2404_s11 + $0x18] sm:$0xff] (%p2327_p3)   ;;  %v456_v28 = vld [vmem:[%s2404_s11 + $0x20] sm:$0xff] (%p2327_p3)   ;;  %v460_v29 = vld [vmem:[%s2404_s11 + $0x28] sm:$0xff] (%p2327_p3)   ;;  %441 = vst [vmem:[%s2412_s12] sm:$0xff] (%p2327_p3), %v440_v24  }
  0x24   : > { %445 = vst [vmem:[%s2412_s12 + $0x8] sm:$0xff] (%p2327_p3), %v444_v25   ;;  %449 = vst [vmem:[%s2412_s12 + $0x10] sm:$0xff] (%p2327_p3), %v448_v26   ;;  %v464_v30 = vld [vmem:[%s2404_s11 + $0x30] sm:$0xff] (%p2327_p3)   ;;  %v468_v31 = vld [vmem:[%s2404_s11 + $0x38] sm:$0xff] (%p2327_p3)  }
  0x25   : > { %453 = vst [vmem:[%s2412_s12 + $0x18] sm:$0xff] (%p2327_p3), %v452_v27   ;;  %457 = vst [vmem:[%s2412_s12 + $0x20] sm:$0xff] (%p2327_p3), %v456_v28   ;;  %v472_v32 = vld [vmem:[%s2404_s11 + $0x200] sm:$0xff] (%p2327_p3)   ;;  %v476_v33 = vld [vmem:[%s2404_s11 + $0x208] sm:$0xff] (%p2327_p3)  }
  0x26   : > { %461 = vst [vmem:[%s2412_s12 + $0x28] sm:$0xff] %v460_v29   ;;  %465 = vst [vmem:[%s2412_s12 + $0x30] sm:$0xff] %v464_v30   ;;  %v480_v34 = vld [vmem:[%s2404_s11 + $0x210] sm:$0xff]   ;;  %v484_v35 = vld [vmem:[%s2404_s11 + $0x218] sm:$0xff]  }
  0x27   : > { %469 = vst [vmem:[%s2412_s12 + $0x38] sm:$0xff] %v468_v31   ;;  %473 = vst [vmem:[%s2412_s12 + $0x40] sm:$0xff] %v472_v32   ;;  %v488_v36 = vld [vmem:[%s2404_s11 + $0x220] sm:$0xff]   ;;  %v492_v37 = vld [vmem:[%s2404_s11 + $0x228] sm:$0xff]  }
  0x28   : > { %477 = vst [vmem:[%s2412_s12 + $0x48] sm:$0xff] %v476_v33   ;;  %481 = vst [vmem:[%s2412_s12 + $0x50] sm:$0xff] %v480_v34   ;;  %v496_v38 = vld [vmem:[%s2404_s11 + $0x230] sm:$0xff]   ;;  %v500_v39 = vld [vmem:[%s2404_s11 + $0x238] sm:$0xff]  }
  0x29   : > { %485 = vst [vmem:[%s2412_s12 + $0x58] sm:$0xff] %v484_v35   ;;  %489 = vst [vmem:[%s2412_s12 + $0x60] sm:$0xff] %v488_v36   ;;  %v504_v40 = vld [vmem:[%s2404_s11 + $0x400] sm:$0xff]   ;;  %v508_v41 = vld [vmem:[%s2404_s11 + $0x408] sm:$0xff]  }
  0x2a   : > { %493 = vst [vmem:[%s2412_s12 + $0x68] sm:$0xff] %v492_v37   ;;  %497 = vst [vmem:[%s2412_s12 + $0x70] sm:$0xff] %v496_v38   ;;  %v512_v42 = vld [vmem:[%s2404_s11 + $0x410] sm:$0xff]   ;;  %v516_v43 = vld [vmem:[%s2404_s11 + $0x418] sm:$0xff]  }
  0x2b   : > { %501 = vst [vmem:[%s2412_s12 + $0x78] sm:$0xff] %v500_v39   ;;  %505 = vst [vmem:[%s2412_s12 + $0x80] sm:$0xff] %v504_v40   ;;  %v520_v44 = vld [vmem:[%s2404_s11 + $0x420] sm:$0xff]   ;;  %v524_v45 = vld [vmem:[%s2404_s11 + $0x428] sm:$0xff]  }
  0x2c   : > { %509 = vst [vmem:[%s2412_s12 + $0x88] sm:$0xff] %v508_v41   ;;  %513 = vst [vmem:[%s2412_s12 + $0x90] sm:$0xff] %v512_v42   ;;  %v528_v46 = vld [vmem:[%s2404_s11 + $0x430] sm:$0xff]   ;;  %v532_v47 = vld [vmem:[%s2404_s11 + $0x438] sm:$0xff]  }
  0x2d   : > { %517 = vst [vmem:[%s2412_s12 + $0x98] sm:$0xff] %v516_v43   ;;  %521 = vst [vmem:[%s2412_s12 + $0xa0] sm:$0xff] %v520_v44  }
  0x2e   : > { %525 = vst [vmem:[%s2412_s12 + $0xa8] sm:$0xff] %v524_v45   ;;  %529 = vst [vmem:[%s2412_s12 + $0xb0] sm:$0xff] %v528_v46  }
  0x2f   : > { %533 = vst [vmem:[%s2412_s12 + $0xb8] sm:$0xff] %v532_v47  }
  0x30 PF: > { %p1782_p6 = scmp.ge.s32.totalorder %s2268_s19, 1  ;;  %p674_p7 = scmp.lt.s32.totalorder %s2268_s19, 9 }
  0x32   : > { %p675_p8 = pnand %p1782_p6, %p674_p7 }
  0x33   : > { %s681_s13 = sand.u32 (!%p675_p8), 1, %s2252_s15   ;;  %v2270_v48 = vmov (!%p675_p8), 0   ;;  %s1783_s22 = sshll.u32 (!%p675_p8), %s2260_s17, 4 }
  0x34   : > { %678 = sbr.rel (%p675_p8) target bundleno = 355 (0x163), region = 110  ;;  %2181 = vset.pattern.permute.xlu1 (!%p675_p8), %v2270_v48  ;;  %2180 = vset.pattern.permute.xlu0 (!%p675_p8), %v2270_v48  ;;  %p735_p9 = scmp.lt.s32.totalorder (!%p675_p8), %s1783_s22, 127 }
  0x35   : > { %s2459_s14 = smul.u32 (!%p675_p8), 192, %s681_s13 }
  0x37   : > { %s2462_s21 = scalar_lea.vmem (!%p675_p8), [#allocation2], %s2459_s14  ;;  %s2477_s15 = scalar_lea.vmem (!%p675_p8), [#allocation3], %s2459_s14 }
  0x38   : > { %v2182_v49 = vld [vmem:[%s2462_s21 + $0x40] sm:$0xff] (!%p675_p8)   ;;  %v2184_v51 = vld [vmem:[%s2462_s21 + $0x48] sm:$0xff] (!%p675_p8)   ;;  %v2186_v53 = vld [vmem:[%s2462_s21 + $0x50] sm:$0xff] (!%p675_p8)  }
  0x39   : > { %v2183_v50 = vld [vmem:[%s2462_s21] sm:$0xff] (!%p675_p8)   ;;  %1992 = vmatprep.subr.bf16.mxu1 (!%p675_p8), %v2182_v49  ;;  %v2185_v52 = vld [vmem:[%s2462_s21 + $0x8] sm:$0xff] (!%p675_p8)   ;;  %v2187_v54 = vld [vmem:[%s2462_s21 + $0x10] sm:$0xff] (!%p675_p8)  }
  0x3a   : > { %2024 = vmatprep.subr.bf16.mxu0 (!%p675_p8), %v2183_v50  ;;  %1993 = vmatpush3.bf16.msra.mxu1 (!%p675_p8), %v2182_v49  ;;  %v2188_v55 = vld [vmem:[%s2462_s21 + $0x58] sm:$0xff] (!%p675_p8)   ;;  %v2190_v57 = vld [vmem:[%s2462_s21 + $0x60] sm:$0xff] (!%p675_p8)   ;;  %v2192_v59 = vld [vmem:[%s2462_s21 + $0x68] sm:$0xff] (!%p675_p8)  }
  0x3b   : > { %2025 = vmatpush3.bf16.msra.mxu0 %v2183_v50  ;;  %1994 = vmatprep.subr.bf16.mxu1 %v2184_v51  ;;  %v2189_v56 = vld [vmem:[%s2462_s21 + $0x18] sm:$0xff]   ;;  %v2191_v58 = vld [vmem:[%s2462_s21 + $0x20] sm:$0xff]   ;;  %v2193_v60 = vld [vmem:[%s2462_s21 + $0x28] sm:$0xff]   ;;  %s2706_s22 = smov (!%p735_p9, %s1783_s22), 127 }
  0x3c   : > { %2026 = vmatprep.subr.bf16.mxu0 %v2185_v52  ;;  %v2198_v61 = vld [vmem:[%s2477_s15 + $0x40] sm:$0xff]   ;;  %v2194_v63 = vld [vmem:[%s2462_s21 + $0x70] sm:$0xff]   ;;  %v2196_v1 = vld [vmem:[%s2462_s21 + $0x78] sm:$0xff]   ;;  %s1786_s17 = sshll.u32 %s2706_s22, 3  ;;  %s1784_s27 = sshll.u32 %s2706_s22, 2 }
  0x3d   : > { %v2199_v62 = vld [vmem:[%s2477_s15] sm:$0xff]   ;;  %2008 = vmatprep.mubr.bf16.mxu1 %v2198_v61  ;;  %v2195_v0 = vld [vmem:[%s2462_s21 + $0x30] sm:$0xff]   ;;  %v2197_v2 = vld [vmem:[%s2462_s21 + $0x38] sm:$0xff]   ;;  %s2507_s26 = scalar_lea.vmem %s2696_s3, %s1786_s17  ;;  %s741_s30 = scalar_lea.vmem %s2695_s2, %s1784_s27 }
  0x3e   : > { %1995 = vmatpush3.bf16.msra.mxu1 %v2184_v51  ;;  %2040 = vmatprep.mubr.bf16.mxu0 %v2199_v62  ;;  %v2202_v3 = vld [vmem:[%s2462_s21 + $0x80] sm:$0xff]   ;;  %v2200_v4 = vld [vmem:[%s2477_s15 + $0x48] sm:$0xff]   ;;  %v2204_v7 = vld [vmem:[%s2477_s15 + $0x50] sm:$0xff]   ;;  %s2628_s7 = scalar_lea.vmem %s2697_s4, %s1786_s17 }
  0x3f   : > { %2027 = vmatpush3.bf16.msra.mxu0 %v2185_v52  ;;  %1996 = vmatprep.subr.bf16.mxu1 %v2186_v53  ;;  %v2201_v5 = vld [vmem:[%s2477_s15 + $0x8] sm:$0xff]   ;;  %v2205_v8 = vld [vmem:[%s2477_s15 + $0x10] sm:$0xff]   ;;  %v2206_v10 = vld [vmem:[%s2477_s15 + $0x58] sm:$0xff]  }
  0x40   : > { %2028 = vmatprep.subr.bf16.mxu0 %v2187_v54  ;;  %v2203_v6 = vld [vmem:[%s2462_s21 + $0x88] sm:$0xff]   ;;  %v2208_v9 = vld [vmem:[%s2462_s21 + $0x90] sm:$0xff]   ;;  %v2207_v11 = vld [vmem:[%s2477_s15 + $0x18] sm:$0xff]  }
  0x41   : > { %v2209_v12 = vld [vmem:[%s2462_s21 + $0x98] sm:$0xff]   ;;  %v2210_v13 = vld [vmem:[%s2477_s15 + $0x60] sm:$0xff]   ;;  %v2212_v16 = vld [vmem:[%s2477_s15 + $0x68] sm:$0xff]  }
  0x42   : > { %1997 = vmatpush3.bf16.msra.mxu1 %v2186_v53  ;;  %v2211_v14 = vld [vmem:[%s2477_s15 + $0x20] sm:$0xff]   ;;  %v2213_v17 = vld [vmem:[%s2477_s15 + $0x28] sm:$0xff]   ;;  %v1456_v19 = vld [vmem:[%s2507_s26 + $0x10] sm:$0xff] }
  0x43   : > { %2029 = vmatpush3.bf16.msra.mxu0 %v2187_v54  ;;  %1998 = vmatprep.subr.bf16.mxu1 %v2188_v55  ;;  %v2214_v15 = vld [vmem:[%s2462_s21 + $0xa0] sm:$0xff]   ;;  %v2215_v18 = vld [vmem:[%s2462_s21 + $0xa8] sm:$0xff]   ;;  %v2216_v21 = vld [vmem:[%s2477_s15 + $0x70] sm:$0xff]  }
  0x44   : > { %2030 = vmatprep.subr.bf16.mxu0 %v2189_v56  ;;  %v1454_v20 = vld [vmem:[%s2507_s26] sm:$0xff]  ;;  %1482 = vperm.xlu1 %2181, %v1456_v19   ;;  %v2217_v22 = vld [vmem:[%s2477_s15 + $0x30] sm:$0xff]   ;;  %v1457_v23 = vld [vmem:[%s2507_s26 + $0x18] sm:$0xff] }
  0x45   : > { %1472 = vperm.xlu0 %2180, %v1454_v20   ;;  %v2220_v24 = vld [vmem:[%s2462_s21 + $0xb0] sm:$0xff]   ;;  %v1455_v25 = vld [vmem:[%s2507_s26 + $0x8] sm:$0xff]  ;;  %v2218_v26 = vld [vmem:[%s2477_s15 + $0x78] sm:$0xff]  }
  0x46   : > { %1999 = vmatpush3.bf16.msra.mxu1 %v2188_v55  ;;  %v2219_v27 = vld [vmem:[%s2477_s15 + $0x38] sm:$0xff]   ;;  %v1459_v28 = vld [vmem:[%s2507_s26 + $0x28] sm:$0xff]  ;;  %v2222_v30 = vld [vmem:[%s2477_s15 + $0x80] sm:$0xff]  }
  0x47   : > { %2031 = vmatpush3.bf16.msra.mxu0 %v2189_v56  ;;  %2000 = vmatprep.subr.bf16.mxu1 %v2190_v57  ;;  %v2221_v29 = vld [vmem:[%s2462_s21 + $0xb8] sm:$0xff]   ;;  %v2223_v31 = vld [vmem:[%s2477_s15 + $0xa0] sm:$0xff]   ;;  %v2225_v34 = vld [vmem:[%s2477_s15 + $0xa8] sm:$0xff]  }
  0x48   : > { %2032 = vmatprep.subr.bf16.mxu0 %v2191_v58  ;;  %1487 = vperm.xlu1 %2181, %v1457_v23   ;;  %v1458_v32 = vld [vmem:[%s2507_s26 + $0x20] sm:$0xff]  ;;  %v1461_v33 = vld [vmem:[%s2507_s26 + $0x38] sm:$0xff]  ;;  %v2224_v35 = vld [vmem:[%s2477_s15 + $0x88] sm:$0xff]  }
  0x49   : > { %1477 = vperm.xlu0 %2180, %v1455_v25   ;;  %v2227_v36 = vld [vmem:[%s2477_s15 + $0xb0] sm:$0xff]   ;;  %v1463_v39 = vld [vmem:[%s2507_s26 + $0x48] sm:$0xff]  ;;  %v1462_v40 = vld [vmem:[%s2507_s26 + $0x40] sm:$0xff] }
  0x4a   : > { %2001 = vmatpush3.bf16.msra.mxu1 %v2190_v57  ;;  %v1460_v37 = vld [vmem:[%s2507_s26 + $0x30] sm:$0xff]  ;;  %v1465_v41 = vld [vmem:[%s2507_s26 + $0x58] sm:$0xff]  ;;  %v1467_v45 = vld [vmem:[%s2507_s26 + $0x68] sm:$0xff] }
  0x4b   : > { %2033 = vmatpush3.bf16.msra.mxu0 %v2191_v58  ;;  %2002 = vmatprep.subr.bf16.mxu1 %v2192_v59  ;;  %v2226_v38 = vld [vmem:[%s2477_s15 + $0x90] sm:$0xff]   ;;  %v2229_v42 = vld [vmem:[%s2477_s15 + $0xb8] sm:$0xff]   ;;  %v1466_v46 = vld [vmem:[%s2507_s26 + $0x60] sm:$0xff] }
  0x4c   : > { %2034 = vmatprep.subr.bf16.mxu0 %v2193_v60  ;;  %1497 = vperm.xlu1 %2181, %v1459_v28   ;;  %v2228_v43 = vld [vmem:[%s2477_s15 + $0x98] sm:$0xff]   ;;  %v1464_v44 = vld [vmem:[%s2507_s26 + $0x50] sm:$0xff]  ;;  %v2586_v25 = vld [vmem:[%s741_s30 + $0x8] sm:$0xff]  }
  0x4d   : > { %1492 = vperm.xlu0 %2180, %v1458_v32   ;;  %v1469_v47 = vld [vmem:[%s2507_s26 + $0x78] sm:$0xff]  ;;  %v1468_v48 = vld [vmem:[%s2507_s26 + $0x70] sm:$0xff] }
  0x4e   : > { %2003 = vmatpush3.bf16.msra.mxu1 %v2192_v59  ;;  %v2594_v32 = vld [vmem:[%s741_s30 + $0x18] sm:$0xff]  }
  0x4f   : > { %2035 = vmatpush3.bf16.msra.mxu0 %v2193_v60  ;;  %2004 = vmatprep.subr.bf16.mxu1 %v2194_v63 }
  0x50   : > { %2036 = vmatprep.subr.bf16.mxu0 %v2195_v0  ;;  %1507 = vperm.xlu1 %2181, %v1461_v33   ;;  %v2596_v33 = vld [vmem:[%s741_s30 + $0x38] sm:$0xff]  }
  0x51   : > { %1502 = vperm.xlu0 %2180, %v1460_v37   ;;  %v2601_v37 = vld [vmem:[%s741_s30 + $0x30] sm:$0xff]  }
  0x52   : > { %2005 = vmatpush3.bf16.msra.mxu1 %v2194_v63 }
  0x53   : > { %2037 = vmatpush3.bf16.msra.mxu0 %v2195_v0  ;;  %2006 = vmatprep.subr.bf16.mxu1 %v2196_v1 }
  0x54   : > { %2038 = vmatprep.subr.bf16.mxu0 %v2197_v2  ;;  %1517 = vperm.xlu1 %2181, %v1463_v39  }
  0x55   : > { %1512 = vperm.xlu0 %2180, %v1462_v40  }
  0x56   : > { %2007 = vmatpush3.bf16.msra.mxu1 %v2196_v1 }
  0x57   : > { %2039 = vmatpush3.bf16.msra.mxu0 %v2197_v2  ;;  %2088 = vmatprep.subr.bf16.mxu1 %v2202_v3 }
  0x58   : > { %2056 = vmatprep.subr.bf16.mxu0 %v2202_v3  ;;  %1527 = vperm.xlu1 %2181, %v1465_v41   ;;  %v1912_v41 = vunpack.c.h.bf16 %v2586_v25 }
  0x59   : > { %2009 = vmatmul.mubr.bf16.vlgmr.msra.gmra.mrb[0].mxu1 %v2200_v4  ;;  %1522 = vperm.xlu0 %2180, %v1464_v44  }
  0x5a   : > { %2041 = vmatmul.mubr.bf16.vlgmr.msra.gmra.mrb[0].mxu0 %v2201_v5  ;;  %2096 = vmatpush3.bf16.msra.mxu1 %v2202_v3 }
  0x5b   : > { %2057 = vmatpush3.bf16.msra.mxu0 %v2202_v3  ;;  %2089 = vmatprep.subr.bf16.mxu1 %v2203_v6 }
  0x5c   : > { %2058 = vmatprep.subr.bf16.mxu0 %v2203_v6  ;;  %2012 = vmatprep.mubr.bf16.mxu1 %v2204_v7 }
  0x5d   : > { %2044 = vmatprep.mubr.bf16.mxu0 %v2205_v8  ;;  %1537 = vperm.xlu1 %2181, %v1467_v45  }
  0x5e   : > { %2097 = vmatpush3.bf16.msra.mxu1 %v2203_v6  ;;  %1532 = vperm.xlu0 %2180, %v1466_v46  }
  0x5f   : > { %2059 = vmatpush3.bf16.msra.mxu0 %v2203_v6  ;;  %2090 = vmatprep.subr.bf16.mxu1 %v2208_v9 }
  0x60   : > { %2060 = vmatprep.subr.bf16.mxu0 %v2208_v9 }
  0x61   : > { %2013 = vmatmul.mubr.bf16.gmra.mrb[4].mxu1 %v2206_v10  ;;  %1547 = vperm.xlu1 %2181, %v1469_v47   ;;  %v1919_v47 = vunpack.c.l.bf16 %v2594_v32 }
  0x62   : > { %2045 = vmatmul.mubr.bf16.gmra.mrb[4].mxu0 %v2207_v11  ;;  %2098 = vmatpush3.bf16.msra.mxu1 %v2208_v9 }
  0x63   : > { %2061 = vmatpush3.bf16.msra.mxu0 %v2208_v9  ;;  %2091 = vmatprep.subr.bf16.mxu1 %v2209_v12 }
  0x64   : > { %2062 = vmatprep.subr.bf16.mxu0 %v2209_v12  ;;  %2016 = vmatprep.mubr.bf16.mxu1 %v2210_v13 }
  0x65   : > { %2048 = vmatprep.mubr.bf16.mxu0 %v2211_v14  ;;  %1542 = vperm.xlu0 %2180, %v1468_v48   ;;  %v1935_v48 = vunpack.c.l.bf16 %v2596_v33 }
  0x66   : > { %2099 = vmatpush3.bf16.msra.mxu1 %v2209_v12 }
  0x67   : > { %2063 = vmatpush3.bf16.msra.mxu0 %v2209_v12  ;;  %2092 = vmatprep.subr.bf16.mxu1 %v2214_v15 }
  0x68   : > { %2064 = vmatprep.subr.bf16.mxu0 %v2214_v15 }
  0x69   : > { %2017 = vmatmul.mubr.bf16.gmra.mrb[8].mxu1 %v2212_v16 }
  0x6a   : > { %2049 = vmatmul.mubr.bf16.gmra.mrb[8].mxu0 %v2213_v17  ;;  %2100 = vmatpush3.bf16.msra.mxu1 %v2214_v15 }
  0x6b   : > { %2065 = vmatpush3.bf16.msra.mxu0 %v2214_v15  ;;  %2093 = vmatprep.subr.bf16.mxu1 %v2215_v18 }
  0x6c   : > { %2066 = vmatprep.subr.bf16.mxu0 %v2215_v18  ;;  %2020 = vmatprep.mubr.bf16.mxu1 %v2216_v21 }
  0x6d   : > { %2052 = vmatprep.mubr.bf16.mxu0 %v2217_v22 }
  0x6e   : > { %2101 = vmatpush3.bf16.msra.mxu1 %v2215_v18 }
  0x6f   : > { %2067 = vmatpush3.bf16.msra.mxu0 %v2215_v18  ;;  %2094 = vmatprep.subr.bf16.mxu1 %v2220_v24 }
  0x70   : > { %2068 = vmatprep.subr.bf16.mxu0 %v2220_v24 }
  0x71   : > { %2021 = vmatmul.mubr.bf16.gmra.mrb[12].mxu1 %v2218_v26  ;;  %v1941_v26 = vld [vmem:[%s741_s30 + $0x28] sm:$0xff]  }
  0x72   : > { %2053 = vmatmul.mubr.bf16.gmra.mrb[12].mxu0 %v2219_v27  ;;  %2102 = vmatpush3.bf16.msra.mxu1 %v2220_v24 }
  0x73   : > { %2069 = vmatpush3.bf16.msra.mxu0 %v2220_v24  ;;  %2095 = vmatprep.subr.bf16.mxu1 %v2221_v29 }
  0x74   : > { %2070 = vmatprep.subr.bf16.mxu0 %v2221_v29  ;;  %2072 = vmatprep.mubr.bf16.mxu0 %v2222_v30  ;;  %v1940_v30 = vld [vmem:[%s741_s30 + $0x20] sm:$0xff]  }
  0x75   : > { %2080 = vmatprep.mubr.bf16.mxu1 %v2223_v31  ;;  %v1923_v40 = vunpack.c.l.bf16 %v1940_v30  ;;  %v1924_v46 = vunpack.c.h.bf16 %v1940_v30 }
  0x76   : > { %2103 = vmatpush3.bf16.msra.mxu1 %v2221_v29 }
  0x77   : > { %2071 = vmatpush3.bf16.msra.mxu0 %v2221_v29  ;;  %v2590_v29 = vld [vmem:[%s741_s30] sm:$0xff]  }
  0x78   : > { %v1907_v39 = vunpack.c.l.bf16 %v2590_v29  ;;  %v1908_v45 = vunpack.c.h.bf16 %v2590_v29 }
  0x79   : > { %2081 = vmatmul.mubr.bf16.vlgmr.msra.gmra.mrb[16].mxu1 %v2225_v34  ;;  %v1911_v34 = vunpack.c.l.bf16 %v2586_v25 }
  0x7a   : > { %2073 = vmatmul.mubr.bf16.vlgmr.msra.gmra.mrb[0].mxu0 %v2224_v35  ;;  %2084 = vmatprep.mubr.bf16.mxu1 %v2227_v36  ;;  %v1927_v35 = vunpack.c.l.bf16 %v1941_v26  ;;  %v2599_v36 = vld [vmem:[%s741_s30 + $0x10] sm:$0xff]  }
  0x7b   : > { %2076 = vmatprep.mubr.bf16.mxu0 %v2226_v38 }
  0x81   : > { %2085 = vmatmul.mubr.bf16.gmra.mrb[20].mxu1 %v2229_v42  ;;  %v1928_v42 = vunpack.c.h.bf16 %v1941_v26  ;;  %v1932_v26 = vunpack.c.h.bf16 %v2601_v37 }
  0x82   : > { %2077 = vmatmul.mubr.bf16.gmra.mrb[4].mxu0 %v2228_v43 }
  0xc3   : > { %v2544_v50 = vpop.permute.xlu1 %1482 }
  0xc4   : > { %v2542_v49 = vpop.permute.xlu0 %1472 }
  0xc7   : > { %v2554_v55 = vpop.permute.xlu1 %1487 }
  0xc8   : > { %v2546_v51 = vpop.permute.xlu0 %1477 }
  0xcb   : > { %v2562_v59 = vpop.permute.xlu1 %1497 }
  0xcc   : > { %v2558_v57 = vpop.permute.xlu0 %1492 }
  0xcf   : > { %v2572_v0 = vpop.permute.xlu1 %1507 }
  0xd0   : > { %v2566_v61 = vpop.permute.xlu0 %1502 }
  0xd3   : > { %v2577_v14 = vpop.permute.xlu1 %1517 }
  0xd4   : > { %v2574_v1 = vpop.permute.xlu0 %1512 }
  0xd7   : > { %v1528_v38 = vpop.permute.xlu1 %1527 }
  0xd8   : > { %v1523_v15 = vpop.permute.xlu0 %1522 }
  0xdd   : > { %v2605_v43 = vpop.permute.xlu0 %1532 }
 0x12c   : > { %v2548_v52 = vpop.f32.mrb[0].mxu1 }
 0x12d   : > { %v2550_v53 = vpop.f32.mrb[1].mxu1 }
 0x12e   : > { %v2552_v54 = vpop.f32.mrb[2].mxu1 }
 0x12f   : > { %v2556_v56 = vpop.f32.mrb[3].mxu1 }
 0x134   : > { %v2560_v58 = vpop.f32.mrb[4].mxu1 }
 0x135   : > { %v2564_v60 = vpop.f32.mrb[5].mxu1 }
 0x136   : > { %v2568_v62 = vpop.f32.mrb[6].mxu1 }
 0x137   : > { %v2570_v63 = vpop.f32.mrb[7].mxu1 }
 0x13c   : > { %v2018_v2 = vpop.f32.mrb[8].mxu1 }
 0x13d   : > { %v2050_v3 = vpop.f32.mrb[8].mxu0  ;;  %v987_v4 = vpop.f32.mrb[9].mxu1 }
 0x13e   : > { %v1189_v5 = vadd.f32 %v2050_v3, %v2018_v2  ;;  %v1180_v6 = vpop.f32.mrb[9].mxu0  ;;  %v2019_v7 = vpop.f32.mrb[10].mxu1 }
 0x13f   : > { %v1181_v8 = vadd.f32 %v1180_v6, %v987_v4  ;;  %v2051_v9 = vpop.f32.mrb[10].mxu0  ;;  %v990_v10 = vpop.f32.mrb[11].mxu1  ;;  %v1915_v6 = vunpack.c.l.bf16 %v2599_v36 }
 0x140   : > { %v1192_v11 = vadd.f32 %v2051_v9, %v2019_v7  ;;  %v1183_v12 = vpop.f32.mrb[11].mxu0  ;;  %v1931_v7 = vunpack.c.l.bf16 %v2601_v37  ;;  %v1920_v9 = vunpack.c.h.bf16 %v2594_v32 }
 0x141   : > { %v1184_v13 = vadd.f32 %v1183_v12, %v990_v10 }
 0x144   : > { %v2022_v16 = vpop.f32.mrb[12].mxu1 }
 0x145   : > { %v2054_v17 = vpop.f32.mrb[12].mxu0  ;;  %v1003_v18 = vpop.f32.mrb[13].mxu1 }
 0x146   : > { %v2582_v19 = vadd.f32 %v2054_v17, %v2022_v16  ;;  %v1196_v20 = vpop.f32.mrb[13].mxu0  ;;  %v2023_v21 = vpop.f32.mrb[14].mxu1 }
 0x147   : > { %v2584_v22 = vadd.f32 %v1196_v20, %v1003_v18  ;;  %v2055_v23 = vpop.f32.mrb[14].mxu0  ;;  %v1006_v24 = vpop.f32.mrb[15].mxu1  ;;  %v1936_v18 = vunpack.c.h.bf16 %v2596_v33  ;;  %v1916_v20 = vunpack.c.h.bf16 %v2599_v36 }
 0x148   : > { %v2588_v27 = vadd.f32 %v2055_v23, %v2023_v21  ;;  %v1199_v28 = vpop.f32.mrb[15].mxu0 }
 0x149   : > { %v2592_v31 = vadd.f32 %v1199_v28, %v1006_v24 }
 0x14c   : > { %v2082_v44 = vpop.f32.mrb[16].mxu1 }
 0x14d   : > { %v2074_v2 = vpop.f32.mrb[0].mxu0  ;;  %v1448_v3 = vadd.f32 %v2082_v44, %v1189_v5  ;;  %v1407_v4 = vpop.f32.mrb[17].mxu1 }
 0x14e   : > { %v2104_v10 = vadd.f32 %v2074_v2, %v2548_v52  ;;  %v1375_v12 = vpop.f32.mrb[1].mxu0  ;;  %v1446_v16 = vadd.f32 %v1407_v4, %v1181_v8  ;;  %v2083_v17 = vpop.f32.mrb[18].mxu1 }
 0x14f   : > { %v1560_v21 = vadd.f32 %v1523_v15, %v1448_v3  ;;  %v2105_v5 = vadd.f32 %v1375_v12, %v2550_v53  ;;  %v2075_v23 = vpop.f32.mrb[2].mxu0  ;;  %v1449_v24 = vadd.f32 %v2083_v17, %v1192_v11  ;;  %v1410_v25 = vpop.f32.mrb[19].mxu1 }
 0x150   : > { %v1552_v28 = vadd.f32 %v2104_v10, %v2544_v50  ;;  %v1558_v52 = vadd.f32 %v2574_v1, %v1446_v16  ;;  %v2106_v8 = vadd.f32 %v2075_v23, %v2552_v54  ;;  %v1378_v29 = vpop.f32.mrb[3].mxu0  ;;  %v1447_v30 = vadd.f32 %v1410_v25, %v1184_v13  ;;  %v1538_v50 = vpop.permute.xlu1 %1537 }
 0x151   : > { %v1608_v44 = vadd.f32 %v1927_v35, %v1560_v21  ;;  %v1550_v2 = vadd.f32 %v2105_v5, %v2542_v49  ;;  %v1561_v4 = vadd.f32 %v1528_v38, %v1449_v24  ;;  %v2107_v15 = vadd.f32 %v1378_v29, %v2556_v56  ;;  %v1543_v38 = vpop.permute.xlu0 %1542 }
 0x152   : > { %v1600_v53 = vadd.f32 %v1911_v34, %v1552_v28  ;;  %v1606_v1 = vadd.f32 %v1923_v40, %v1558_v52  ;;  %v1553_v54 = vadd.f32 %v2106_v8, %v2554_v55  ;;  %v1559_v11 = vadd.f32 %v2577_v14, %v1447_v30 }
 0x153   : > { %v1624_v13 = vmax.f32 %v1608_v44, 0.0  ;;  %v1598_v35 = vadd.f32 %v1907_v39, %v1550_v2  ;;  %v1609_v49 = vadd.f32 %v1928_v42, %v1561_v4  ;;  %v1551_v56 = vadd.f32 %v2107_v15, %v2546_v51 }
 0x154   : > { %v1616_v3 = vmax.f32 %v1600_v53, 0.0  ;;  %v1622_v10 = vmax.f32 %v1606_v1, 0.0  ;;  %v1601_v12 = vadd.f32 %v1912_v41, %v1553_v54  ;;  %v1607_v16 = vadd.f32 %v1924_v46, %v1559_v11  ;;  %v2086_v17 = vpop.f32.mrb[20].mxu1  ;;  %v1548_v8 = vpop.permute.xlu1 %1547 }
 0x155   : > { %1640 = vst [vmem:[%s2628_s7 + $0x50] sm:$0xff] %v1624_v13  ;;  %v1614_v34 = vmax.f32 %v1598_v35, 0.0  ;;  %v1625_v55 = vmax.f32 %v1609_v49, 0.0  ;;  %v1599_v40 = vadd.f32 %v1908_v45, %v1551_v56  ;;  %v2078_v14 = vpop.f32.mrb[4].mxu0  ;;  %v1452_v39 = vadd.f32 %v2086_v17, %v2582_v19  ;;  %v1423_v21 = vpop.f32.mrb[21].mxu1 }
 0x156   : > { %1632 = vst [vmem:[%s2628_s7 + $0x10] sm:$0xff] %v1616_v3  ;;  %1638 = vst [vmem:[%s2628_s7 + $0x40] sm:$0xff] %v1622_v10  ;;  %v1617_v51 = vmax.f32 %v1601_v12, 0.0  ;;  %v1623_v42 = vmax.f32 %v1607_v16, 0.0  ;;  %v2108_v41 = vadd.f32 %v2078_v14, %v2560_v58  ;;  %v1391_v46 = vpop.f32.mrb[5].mxu0  ;;  %v1450_v5 = vadd.f32 %v1423_v21, %v2584_v22  ;;  %v2087_v23 = vpop.f32.mrb[22].mxu1 }
 0x157   : > { %1630 = vst [vmem:[%s2628_s7] sm:$0xff] %v1614_v34  ;;  %1641 = vst [vmem:[%s2628_s7 + $0x58] sm:$0xff] %v1625_v55  ;;  %v1615_v45 = vmax.f32 %v1599_v40, 0.0  ;;  %v1564_v24 = vadd.f32 %v1543_v38, %v1452_v39  ;;  %v2109_v19 = vadd.f32 %v1391_v46, %v2564_v60  ;;  %v2079_v25 = vpop.f32.mrb[6].mxu0  ;;  %v1453_v28 = vadd.f32 %v2087_v23, %v2588_v27  ;;  %v1426_v52 = vpop.f32.mrb[23].mxu1 }
 0x158   : > { %1633 = vst [vmem:[%s2628_s7 + $0x18] sm:$0xff] %v1617_v51  ;;  %1639 = vst [vmem:[%s2628_s7 + $0x48] sm:$0xff] %v1623_v42  ;;  %v1556_v58 = vadd.f32 %v2108_v41, %v2566_v61  ;;  %v1562_v29 = vadd.f32 %v2605_v43, %v1450_v5  ;;  %v2110_v22 = vadd.f32 %v2079_v25, %v2568_v62  ;;  %v1394_v30 = vpop.f32.mrb[7].mxu0 }
 0x159   : > { %v1451_v44 = vadd.f32 %v1426_v52, %v2592_v31  ;;  %1631 = vst [vmem:[%s2628_s7 + $0x8] sm:$0xff] %v1615_v45  ;;  %v1612_v60 = vadd.f32 %v1935_v48, %v1564_v24  ;;  %v1554_v27 = vadd.f32 %v2109_v19, %v2558_v57  ;;  %v1565_v2 = vadd.f32 %v1548_v8, %v1453_v28 }
 0x15a   : > { %v2111_v4 = vadd.f32 %v1394_v30, %v2570_v63  ;;  %v1604_v61 = vadd.f32 %v1919_v47, %v1556_v58  ;;  %v1610_v62 = vadd.f32 %v1931_v7, %v1562_v29  ;;  %v1557_v31 = vadd.f32 %v2110_v22, %v2572_v0 }
 0x15b   : > { %v1563_v43 = vadd.f32 %v1538_v50, %v1451_v44  ;;  %v1628_v15 = vmax.f32 %v1612_v60, 0.0  ;;  %v1602_v48 = vadd.f32 %v1915_v6, %v1554_v27  ;;  %v1613_v57 = vadd.f32 %v1936_v18, %v1565_v2 }
 0x15c   : > { %v1555_v63 = vadd.f32 %v2111_v4, %v2562_v59  ;;  %v1620_v47 = vmax.f32 %v1604_v61, 0.0  ;;  %v1626_v53 = vmax.f32 %v1610_v62, 0.0  ;;  %v1605_v0 = vadd.f32 %v1920_v9, %v1557_v31 }
 0x15d   : > { %v1611_v7 = vadd.f32 %v1932_v26, %v1563_v43  ;;  %1644 = vst [vmem:[%s2628_s7 + $0x70] sm:$0xff] %v1628_v15  ;;  %v1618_v50 = vmax.f32 %v1602_v48, 0.0  ;;  %v1629_v6 = vmax.f32 %v1613_v57, 0.0 }
 0x15e   : > { %v1603_v33 = vadd.f32 %v1916_v20, %v1555_v63  ;;  %1636 = vst [vmem:[%s2628_s7 + $0x30] sm:$0xff] %v1620_v47  ;;  %1642 = vst [vmem:[%s2628_s7 + $0x60] sm:$0xff] %v1626_v53  ;;  %v1621_v59 = vmax.f32 %v1605_v0, 0.0 }
 0x15f   : > { %v1627_v18 = vmax.f32 %v1611_v7, 0.0  ;;  %1634 = vst [vmem:[%s2628_s7 + $0x20] sm:$0xff] %v1618_v50  ;;  %1645 = vst [vmem:[%s2628_s7 + $0x78] sm:$0xff] %v1629_v6 }
 0x160   : > { %v1619_v1 = vmax.f32 %v1603_v33, 0.0  ;;  %1637 = vst [vmem:[%s2628_s7 + $0x38] sm:$0xff] %v1621_v59 }
 0x161   : > { %1643 = vst [vmem:[%s2628_s7 + $0x68] sm:$0xff] %v1627_v18 }
 0x162   : > { %1635 = vst [vmem:[%s2628_s7 + $0x28] sm:$0xff] %v1619_v1 }
 0x163 PF: > { %s14_s19 = sadd.s32 1, %s2268_s19   ;;  %s2699_s15 = smov %s2256_s16 }
 0x164   : > { %p11_p10 = scmp.ge.s32.totalorder %s14_s19, 10   ;;  %s2700_s16 = smov %s2335_s24 }
 0x165   : > { %s2701_s17 = smov %s2264_s18  ;;  %s2702_s18 = smov %s2704_s20 }
 0x166   :  { %13 = sbr.rel (!%p11_p10) target bundleno = 3 (0x3), region = 171 }

</bundles_post_ra>
